<compile_context>
chip_gen: v6e
topology: v6e:2x2x1
jax: 0.10.0
libtpu: 0.0.40
codegen_flags: <defaults>
</compile_context>

<pallas_src>
import math

import jax
import jax.numpy as jnp
from jax.experimental import pallas as pl
from jax.experimental.pallas import tpu as pltpu


LANE = 128
SUBLANE = 8


def _round_up(x, m):
    return ((x + m - 1) // m) * m


def _pad2d(x, rows, cols):
    return jnp.pad(x, ((0, rows - x.shape[0]), (0, cols - x.shape[1])))


def clip_classifier_kernel(patches_ref, pool_ref, w_patch_ref, w_proj_ref,
                           w_head_ref, out_ref):
    """One grid step == TB images (TB * P_pad flattened patch rows)."""
    # --- synthetic clip_model.visual: patch embed (bf16 MXU, f32 acc) -> GELU
    emb = jnp.dot(patches_ref[...], w_patch_ref[...],
                  preferred_element_type=jnp.float32)          # (TB*Pp, EP) f32
    emb = jax.nn.gelu(emb)                                     # f32 (v5e-safe)

    # --- per-image mean pool as one bf16 MXU pass with a host-built
    # block-diagonal (TB, TB*P_pad) pooling matrix (no in-kernel jnp.full,
    # no cross-sublane reduce of the big emb array).
    pooled = jnp.dot(pool_ref[...], emb.astype(jnp.bfloat16),
                     preferred_element_type=jnp.float32)       # (TB, EP) f32

    # --- projection to CLIP feature space (bf16 MXU, f32 acc)
    feat = jnp.dot(pooled.astype(jnp.bfloat16), w_proj_ref[...],
                   preferred_element_type=jnp.float32)         # (TB, DP) f32

    # --- image_features /= image_features.norm(dim=-1, keepdim=True)
    # fused rsqrt on the EUP + epsilon guard (also covers all-zero padded rows)
    inv_norm = jax.lax.rsqrt(
        jnp.sum(feat * feat, axis=-1, keepdims=True) + 1e-12)
    feat = feat * inv_norm

    # --- ClassificationHead: weights pre-transposed to (D, K), pre-scaled by
    # logit_scale, bf16 on the MXU with f32 accumulation; zero bias dropped.
    out_ref[...] = jnp.dot(feat.astype(jnp.bfloat16), w_head_ref[...],
                           preferred_element_type=jnp.float32)  # (TB, KP) f32


def image_classifier_clip_forward(image, w_patch, w_proj, w_head, *,
                                  patch=8, tb=None):
    """image: (B, C, H, W) f32; w_patch: (C*p*p, E); w_proj: (E, D);
    w_head: (K, D) = logit_scale * L2-normalized text features."""
    B, C, H, W = image.shape
    ph = pw = patch
    Hp, Wp = H // ph, W // pw
    P = Hp * Wp
    Dp = C * ph * pw
    E = w_patch.shape[1]
    D = w_proj.shape[1]
    K = w_head.shape[0]

    # --- tile sizes ---------------------------------------------------------
    # TB images per grid step.  TB is a multiple of 8 so the (TB, KP) output
    # block is full (8,128) tiles (unmasked vst) and the pool/proj/head
    # matmuls use >= 8 MXU rows.  For B >= 16 we pick TB <= B/2 so the
    # "parallel" batch grid has >= 2 steps (v7x has 2 TensorCores).
    if tb is None:
        tb = min(64, max(SUBLANE, _round_up(B // 2, SUBLANE)))
    tb = max(SUBLANE, _round_up(tb, SUBLANE))
    B_pad = _round_up(B, tb)
    num_steps = B_pad // tb

    P_pad = _round_up(P, SUBLANE)
    # NOTE: at real CLIP sizes pick P_pad / TB so TB*P_pad is a multiple of
    # 256 (v6e/v7x MXU M-alignment; 128 is enough on v5e) and so that the
    # double-buffered (TB*P_pad, DpP) patch tile fits v7x's 64 MiB VMEM
    # (raise vmem_limit_bytes via pltpu.CompilerParams if needed).
    DpP = _round_up(Dp, LANE)
    EP = _round_up(E, LANE)
    DP = _round_up(D, LANE)
    KP = _round_up(K, LANE)
    rows = tb * P_pad

    # --- host-side glue: NCHW -> flat (B_pad*P_pad, DpP) bf16 patch matrix --
    # TODO(synk): at real image sizes this transpose+pad is a full HBM round
    # trip outside the kernel; switch the host layout to NHWC / pre-patched,
    # or absorb the patch gather into the kernel DMA via a (B, Hp, Wp) grid.
    patches = image.astype(jnp.float32).reshape(B, C, Hp, ph, Wp, pw)
    patches = patches.transpose(0, 2, 4, 1, 3, 5).reshape(B, P, Dp)
    patches = jnp.pad(patches,
                      ((0, B_pad - B), (0, P_pad - P), (0, DpP - Dp)))
    patches = patches.reshape(B_pad * P_pad, DpP).astype(jnp.bfloat16)

    # Block-diagonal mean-pool matrix: (tb, tb*P_pad), bf16, built once on the
    # host (padded patch rows get weight 0, so the mean is over the real P).
    pool_row = jnp.concatenate(
        [jnp.full((P,), 1.0 / P, jnp.float32),
         jnp.zeros((P_pad - P,), jnp.float32)])
    pool = jnp.kron(jnp.eye(tb, dtype=jnp.float32), pool_row[None, :])
    pool = pool.astype(jnp.bfloat16)

    # Zero-pad every lane dim to a multiple of 128 (numerics unchanged: padded
    # rows/cols are zero and do not perturb the L2 norm).  All MXU operands
    # bf16 with f32 accumulation; head pre-transposed + pre-scaled by
    # logit_scale; the identically-zero ClassificationHead bias is dropped.
    w_patch_p = _pad2d(w_patch, DpP, EP).astype(jnp.bfloat16)
    w_proj_p = _pad2d(w_proj, EP, DP).astype(jnp.bfloat16)
    w_head_t = _pad2d(w_head.T, DP, KP).astype(jnp.bfloat16)

    def _call(single_buffer_weights):
        if single_buffer_weights:
            # Grid-invariant inputs never change block -> one VMEM buffer each.
            def const_spec(shape):
                return pl.BlockSpec(shape, lambda b: (0,) * len(shape),
                                    pipeline_mode=pl.Buffered(1))
        else:
            def const_spec(shape):
                return pl.BlockSpec(shape, lambda b: (0,) * len(shape))
        return pl.pallas_call(
            clip_classifier_kernel,
            out_shape=jax.ShapeDtypeStruct((B_pad, KP), jnp.float32),
            grid=(num_steps,),
            in_specs=[
                pl.BlockSpec((rows, DpP), lambda b: (b, 0)),
                const_spec((tb, rows)),
                const_spec((DpP, EP)),
                const_spec((EP, DP)),
                const_spec((DP, KP)),
            ],
            out_specs=pl.BlockSpec((tb, KP), lambda b: (b, 0)),
            compiler_params=pltpu.CompilerParams(
                dimension_semantics=("parallel",)),
        )(patches, pool, w_patch_p, w_proj_p, w_head_t)

    try:
        out = _call(True)
    except Exception:
        # Fallback if this jax build rejects pl.Buffered(1) for top-level
        # pallas_call specs; identical semantics, just default double-buffered
        # weights.  Any genuine kernel error re-raises here.
        out = _call(False)

    # Slice off batch padding and the lane-padded class columns before any
    # downstream softmax / argmax.
    return out[:B, :K]


def _reference_forward(image, w_patch, w_proj, w_head, *, patch=8):
    """Pure-JAX reference mirroring the kernel's dtype handling."""
    B, C, H, W = image.shape
    ph = pw = patch
    Hp, Wp = H // ph, W // pw
    P = Hp * Wp
    patches = image.astype(jnp.float32).reshape(B, C, Hp, ph, Wp, pw)
    patches = patches.transpose(0, 2, 4, 1, 3, 5).reshape(B, P, C * ph * pw)
    emb = jnp.einsum('bpd,de->bpe',
                     patches.astype(jnp.bfloat16),
                     w_patch.astype(jnp.bfloat16),
                     preferred_element_type=jnp.float32)
    emb = jax.nn.gelu(emb)
    # mirror the kernel's bf16 pooling matrix (bf16 emb, bf16 1/P, f32 acc)
    inv_p = jnp.asarray(1.0 / P, jnp.bfloat16).astype(jnp.float32)
    pooled = jnp.sum(emb.astype(jnp.bfloat16).astype(jnp.float32),
                     axis=1) * inv_p
    feat = jnp.dot(pooled.astype(jnp.bfloat16), w_proj.astype(jnp.bfloat16),
                   preferred_element_type=jnp.float32)
    feat = feat * jax.lax.rsqrt(
        jnp.sum(feat * feat, axis=-1, keepdims=True) + 1e-12)
    return jnp.dot(feat.astype(jnp.bfloat16),
                   w_head.T.astype(jnp.bfloat16),
                   preferred_element_type=jnp.float32)


if __name__ == "__main__":
    # Small shapes consistent with the forward: image (B, C, H, W).
    # B=16 so the batched grid has 2 "parallel" steps of TB=8 images each.
    B, C, H, W = 16, 4, 16, 16
    PATCH = 8
    E = 32      # synthetic visual-encoder embed width
    D = 32      # CLIP image/text feature dim
    K = 8       # number of classnames

    key = jax.random.PRNGKey(0)
    k_img, k_patch, k_proj, k_text = jax.random.split(key, 4)

    image = jax.random.normal(k_img, (B, C, H, W), dtype=jnp.float32)

    # synthetic image_encoder weights (deterministic)
    w_patch = 0.02 * jax.random.normal(k_patch, (C * PATCH * PATCH, E),
                                       dtype=jnp.float32)
    w_proj = 0.02 * jax.random.normal(k_proj, (E, D), dtype=jnp.float32)

    # ClassificationHead weights = logit_scale * L2-normalized text features.
    # TODO(synk): the real CLIP text tower / tokenizer has no in-script
    # equivalent; text features are synthesized deterministically instead.
    logit_scale = math.exp(math.log(1.0 / 0.07))   # clip_model.logit_scale.exp()
    text_features = jax.random.normal(k_text, (K, D), dtype=jnp.float32)
    text_features = text_features / jnp.linalg.norm(text_features, axis=-1,
                                                    keepdims=True)
    w_head = (logit_scale * text_features).astype(jnp.float32)
    # ClassificationHead bias is zero-initialized (biases=None) -> dropped.

    logits = image_classifier_clip_forward(image, w_patch, w_proj, w_head,
                                           patch=PATCH)
    logits = jax.block_until_ready(logits)

    ref = _reference_forward(image, w_patch, w_proj, w_head, patch=PATCH)
    assert logits.shape == (B, K)
    assert jnp.allclose(logits, ref, atol=2e-2, rtol=2e-2), "mismatch vs reference"

    print("KERNEL_OK")
</pallas_src>

<mosaic_0001>
module attributes {stable_mosaic.version = 11 : i64} {
  func.func @clip_classifier_kernel(%arg0: i32, %arg1: memref<64x256xbf16, #tpu.memory_space<vmem>>, %arg2: memref<8x64xbf16, #tpu.memory_space<vmem>>, %arg3: memref<256x128xbf16, #tpu.memory_space<vmem>>, %arg4: memref<128x128xbf16, #tpu.memory_space<vmem>>, %arg5: memref<128x128xbf16, #tpu.memory_space<vmem>>, %arg6: memref<8x128xf32, #tpu.memory_space<vmem>>) attributes {dimension_semantics = [#tpu.dimension_semantics<parallel>], iteration_bounds = array<i64: 2>, scalar_prefetch = 0 : i64, scratch_operands = 0 : i64, tpu.core_type = #tpu.core_type<tc>, window_params = [{transform_indices = @transform_0, window_bounds = array<i64: 64, 256>}, {pipeline_mode = #tpu.pipeline_mode<synchronous>, transform_indices = @transform_1, window_bounds = array<i64: 8, 64>}, {pipeline_mode = #tpu.pipeline_mode<synchronous>, transform_indices = @transform_2, window_bounds = array<i64: 256, 128>}, {pipeline_mode = #tpu.pipeline_mode<synchronous>, transform_indices = @transform_3, window_bounds = array<i64: 128, 128>}, {pipeline_mode = #tpu.pipeline_mode<synchronous>, transform_indices = @transform_4, window_bounds = array<i64: 128, 128>}, {transform_indices = @transform_5, window_bounds = array<i64: 8, 128>}]} {
    %c0 = arith.constant 0 : index
    %c0_0 = arith.constant 0 : index
    %0 = vector.load %arg1[%c0, %c0_0] : memref<64x256xbf16, #tpu.memory_space<vmem>>, vector<64x256xbf16>
    %c0_1 = arith.constant 0 : index
    %c0_2 = arith.constant 0 : index
    %1 = vector.load %arg3[%c0_1, %c0_2] : memref<256x128xbf16, #tpu.memory_space<vmem>>, vector<256x128xbf16>
    %cst = arith.constant dense<0.000000e+00> : vector<64x128xf32>
    %2 = tpu.matmul %0, %1, %cst {dimension_numbers = #tpu.dot_dimension_numbers<[1], [0], [0], [1], [0, 0, 1, 1], [], []>} : vector<64x256xbf16>, vector<256x128xbf16>, vector<64x128xf32> -> vector<64x128xf32>
    %3 = arith.mulf %2, %2 : vector<64x128xf32>
    %4 = arith.mulf %2, %3 : vector<64x128xf32>
    %cst_3 = arith.constant 4.471500e-02 : f32
    %5 = vector.broadcast %cst_3 : f32 to vector<64x128xf32>
    %6 = arith.mulf %5, %4 : vector<64x128xf32>
    %7 = arith.addf %2, %6 : vector<64x128xf32>
    %cst_4 = arith.constant 0.797884583 : f32
    %8 = vector.broadcast %cst_4 : f32 to vector<64x128xf32>
    %9 = arith.mulf %8, %7 : vector<64x128xf32>
    %10 = math.tanh %9 : vector<64x128xf32>
    %cst_5 = arith.constant 1.000000e+00 : f32
    %11 = vector.broadcast %cst_5 : f32 to vector<64x128xf32>
    %12 = arith.addf %11, %10 : vector<64x128xf32>
    %cst_6 = arith.constant 5.000000e-01 : f32
    %13 = vector.broadcast %cst_6 : f32 to vector<64x128xf32>
    %14 = arith.mulf %13, %12 : vector<64x128xf32>
    %15 = arith.mulf %2, %14 : vector<64x128xf32>
    %c0_7 = arith.constant 0 : index
    %c0_8 = arith.constant 0 : index
    %16 = vector.load %arg2[%c0_7, %c0_8] : memref<8x64xbf16, #tpu.memory_space<vmem>>, vector<8x64xbf16>
    %17 = arith.truncf %15 : vector<64x128xf32> to vector<64x128xbf16>
    %cst_9 = arith.constant dense<0.000000e+00> : vector<8x128xf32>
    %18 = tpu.matmul %16, %17, %cst_9 {dimension_numbers = #tpu.dot_dimension_numbers<[1], [0], [0], [1], [0, 0, 1, 1], [], []>} : vector<8x64xbf16>, vector<64x128xbf16>, vector<8x128xf32> -> vector<8x128xf32>
    %19 = arith.truncf %18 : vector<8x128xf32> to vector<8x128xbf16>
    %c0_10 = arith.constant 0 : index
    %c0_11 = arith.constant 0 : index
    %20 = vector.load %arg4[%c0_10, %c0_11] : memref<128x128xbf16, #tpu.memory_space<vmem>>, vector<128x128xbf16>
    %cst_12 = arith.constant dense<0.000000e+00> : vector<8x128xf32>
    %21 = tpu.matmul %19, %20, %cst_12 {dimension_numbers = #tpu.dot_dimension_numbers<[1], [0], [0], [1], [0, 0, 1, 1], [], []>} : vector<8x128xbf16>, vector<128x128xbf16>, vector<8x128xf32> -> vector<8x128xf32>
    %22 = arith.mulf %21, %21 : vector<8x128xf32>
    %cst_13 = arith.constant dense<0.000000e+00> : vector<8xf32>
    %23 = vector.multi_reduction <add>, %22, %cst_13 [1] : vector<8x128xf32> to vector<8xf32>
    %24 = vector.shape_cast %23 : vector<8xf32> to vector<8x1xf32>
    %cst_14 = arith.constant 9.99999996E-13 : f32
    %25 = vector.broadcast %cst_14 : f32 to vector<8x1xf32>
    %26 = arith.addf %24, %25 : vector<8x1xf32>
    %27 = math.rsqrt %26 : vector<8x1xf32>
    %28 = vector.broadcast %27 : vector<8x1xf32> to vector<8x128xf32>
    %29 = arith.mulf %21, %28 : vector<8x128xf32>
    %30 = arith.truncf %29 : vector<8x128xf32> to vector<8x128xbf16>
    %c0_15 = arith.constant 0 : index
    %c0_16 = arith.constant 0 : index
    %31 = vector.load %arg5[%c0_15, %c0_16] : memref<128x128xbf16, #tpu.memory_space<vmem>>, vector<128x128xbf16>
    %cst_17 = arith.constant dense<0.000000e+00> : vector<8x128xf32>
    %32 = tpu.matmul %30, %31, %cst_17 {dimension_numbers = #tpu.dot_dimension_numbers<[1], [0], [0], [1], [0, 0, 1, 1], [], []>} : vector<8x128xbf16>, vector<128x128xbf16>, vector<8x128xf32> -> vector<8x128xf32>
    %c0_18 = arith.constant 0 : index
    %c0_19 = arith.constant 0 : index
    %33 = vector.load %arg6[%c0_18, %c0_19] : memref<8x128xf32, #tpu.memory_space<vmem>>, vector<8x128xf32>
    tpu.vector_store %arg6[%c0_18, %c0_19], %32 {strides = array<i32>} : memref<8x128xf32, #tpu.memory_space<vmem>>, vector<8x128xf32>,
    return
  }
  func.func @transform_0(%arg0: i32) -> (i32, i32) {
    %c0_i32 = arith.constant 0 : i32
    %c0_i32_0 = arith.constant 0 : i32
    return %arg0, %c0_i32 : i32, i32
  }
  func.func @transform_1(%arg0: i32) -> (i32, i32) {
    %c0_i32 = arith.constant 0 : i32
    %c0_i32_0 = arith.constant 0 : i32
    %c0_i32_1 = arith.constant 0 : i32
    return %c0_i32, %c0_i32_0 : i32, i32
  }
  func.func @transform_2(%arg0: i32) -> (i32, i32) {
    %c0_i32 = arith.constant 0 : i32
    %c0_i32_0 = arith.constant 0 : i32
    %c0_i32_1 = arith.constant 0 : i32
    return %c0_i32, %c0_i32_0 : i32, i32
  }
  func.func @transform_3(%arg0: i32) -> (i32, i32) {
    %c0_i32 = arith.constant 0 : i32
    %c0_i32_0 = arith.constant 0 : i32
    %c0_i32_1 = arith.constant 0 : i32
    return %c0_i32, %c0_i32_0 : i32, i32
  }
  func.func @transform_4(%arg0: i32) -> (i32, i32) {
    %c0_i32 = arith.constant 0 : i32
    %c0_i32_0 = arith.constant 0 : i32
    %c0_i32_1 = arith.constant 0 : i32
    return %c0_i32, %c0_i32_0 : i32, i32
  }
  func.func @transform_5(%arg0: i32) -> (i32, i32) {
    %c0_i32 = arith.constant 0 : i32
    %c0_i32_0 = arith.constant 0 : i32
    return %arg0, %c0_i32 : i32, i32
  }
}

module attributes {stable_mosaic.version = 11 : i64} {
  func.func @clip_classifier_kernel(%arg0: i32, %arg1: memref<64x256xbf16, #tpu.memory_space<vmem>>, %arg2: memref<8x64xbf16, #tpu.memory_space<vmem>>, %arg3: memref<256x128xbf16, #tpu.memory_space<vmem>>, %arg4: memref<128x128xbf16, #tpu.memory_space<vmem>>, %arg5: memref<128x128xbf16, #tpu.memory_space<vmem>>, %arg6: memref<8x128xf32, #tpu.memory_space<vmem>>) attributes {dimension_semantics = [#tpu.dimension_semantics<parallel>], iteration_bounds = array<i64: 2>, scalar_prefetch = 0 : i64, scratch_operands = 0 : i64, tpu.core_type = #tpu.core_type<tc>, window_params = [{transform_indices = @transform_0, window_bounds = array<i64: 64, 256>}, {pipeline_mode = #tpu.pipeline_mode<synchronous>, transform_indices = @transform_1, window_bounds = array<i64: 8, 64>}, {pipeline_mode = #tpu.pipeline_mode<synchronous>, transform_indices = @transform_2, window_bounds = array<i64: 256, 128>}, {pipeline_mode = #tpu.pipeline_mode<synchronous>, transform_indices = @transform_3, window_bounds = array<i64: 128, 128>}, {pipeline_mode = #tpu.pipeline_mode<synchronous>, transform_indices = @transform_4, window_bounds = array<i64: 128, 128>}, {transform_indices = @transform_5, window_bounds = array<i64: 8, 128>}]} {
    %c0 = arith.constant 0 : index
    %c0_0 = arith.constant 0 : index
    %0 = vector.load %arg1[%c0, %c0_0] : memref<64x256xbf16, #tpu.memory_space<vmem>>, vector<64x256xbf16>
    %c0_1 = arith.constant 0 : index
    %c0_2 = arith.constant 0 : index
    %1 = vector.load %arg3[%c0_1, %c0_2] : memref<256x128xbf16, #tpu.memory_space<vmem>>, vector<256x128xbf16>
    %cst = arith.constant dense<0.000000e+00> : vector<64x128xf32>
    %2 = tpu.matmul %0, %1, %cst {dimension_numbers = #tpu.dot_dimension_numbers<[1], [0], [0], [1], [0, 0, 1, 1], [], []>} : vector<64x256xbf16>, vector<256x128xbf16>, vector<64x128xf32> -> vector<64x128xf32>
    %3 = arith.mulf %2, %2 : vector<64x128xf32>
    %4 = arith.mulf %2, %3 : vector<64x128xf32>
    %cst_3 = arith.constant 4.471500e-02 : f32
    %5 = vector.broadcast %cst_3 : f32 to vector<64x128xf32>
    %6 = arith.mulf %5, %4 : vector<64x128xf32>
    %7 = arith.addf %2, %6 : vector<64x128xf32>
    %cst_4 = arith.constant 0.797884583 : f32
    %8 = vector.broadcast %cst_4 : f32 to vector<64x128xf32>
    %9 = arith.mulf %8, %7 : vector<64x128xf32>
    %10 = math.tanh %9 : vector<64x128xf32>
    %cst_5 = arith.constant 1.000000e+00 : f32
    %11 = vector.broadcast %cst_5 : f32 to vector<64x128xf32>
    %12 = arith.addf %11, %10 : vector<64x128xf32>
    %cst_6 = arith.constant 5.000000e-01 : f32
    %13 = vector.broadcast %cst_6 : f32 to vector<64x128xf32>
    %14 = arith.mulf %13, %12 : vector<64x128xf32>
    %15 = arith.mulf %2, %14 : vector<64x128xf32>
    %c0_7 = arith.constant 0 : index
    %c0_8 = arith.constant 0 : index
    %16 = vector.load %arg2[%c0_7, %c0_8] : memref<8x64xbf16, #tpu.memory_space<vmem>>, vector<8x64xbf16>
    %17 = arith.truncf %15 : vector<64x128xf32> to vector<64x128xbf16>
    %cst_9 = arith.constant dense<0.000000e+00> : vector<8x128xf32>
    %18 = tpu.matmul %16, %17, %cst_9 {dimension_numbers = #tpu.dot_dimension_numbers<[1], [0], [0], [1], [0, 0, 1, 1], [], []>} : vector<8x64xbf16>, vector<64x128xbf16>, vector<8x128xf32> -> vector<8x128xf32>
    %19 = arith.truncf %18 : vector<8x128xf32> to vector<8x128xbf16>
    %c0_10 = arith.constant 0 : index
    %c0_11 = arith.constant 0 : index
    %20 = vector.load %arg4[%c0_10, %c0_11] : memref<128x128xbf16, #tpu.memory_space<vmem>>, vector<128x128xbf16>
    %cst_12 = arith.constant dense<0.000000e+00> : vector<8x128xf32>
    %21 = tpu.matmul %19, %20, %cst_12 {dimension_numbers = #tpu.dot_dimension_numbers<[1], [0], [0], [1], [0, 0, 1, 1], [], []>} : vector<8x128xbf16>, vector<128x128xbf16>, vector<8x128xf32> -> vector<8x128xf32>
    %22 = arith.mulf %21, %21 : vector<8x128xf32>
    %cst_13 = arith.constant dense<0.000000e+00> : vector<8xf32>
    %23 = vector.multi_reduction <add>, %22, %cst_13 [1] : vector<8x128xf32> to vector<8xf32>
    %24 = vector.shape_cast %23 : vector<8xf32> to vector<8x1xf32>
    %cst_14 = arith.constant 9.99999996E-13 : f32
    %25 = vector.broadcast %cst_14 : f32 to vector<8x1xf32>
    %26 = arith.addf %24, %25 : vector<8x1xf32>
    %27 = math.rsqrt %26 : vector<8x1xf32>
    %28 = vector.broadcast %27 : vector<8x1xf32> to vector<8x128xf32>
    %29 = arith.mulf %21, %28 : vector<8x128xf32>
    %30 = arith.truncf %29 : vector<8x128xf32> to vector<8x128xbf16>
    %c0_15 = arith.constant 0 : index
    %c0_16 = arith.constant 0 : index
    %31 = vector.load %arg5[%c0_15, %c0_16] : memref<128x128xbf16, #tpu.memory_space<vmem>>, vector<128x128xbf16>
    %cst_17 = arith.constant dense<0.000000e+00> : vector<8x128xf32>
    %32 = tpu.matmul %30, %31, %cst_17 {dimension_numbers = #tpu.dot_dimension_numbers<[1], [0], [0], [1], [0, 0, 1, 1], [], []>} : vector<8x128xbf16>, vector<128x128xbf16>, vector<8x128xf32> -> vector<8x128xf32>
    %c0_18 = arith.constant 0 : index
    %c0_19 = arith.constant 0 : index
    %33 = vector.load %arg6[%c0_18, %c0_19] : memref<8x128xf32, #tpu.memory_space<vmem>>, vector<8x128xf32>
    tpu.vector_store %arg6[%c0_18, %c0_19], %32 {strides = array<i32>} : memref<8x128xf32, #tpu.memory_space<vmem>>, vector<8x128xf32>,
    return
  }
  func.func @transform_0(%arg0: i32) -> (i32, i32) {
    %c0_i32 = arith.constant 0 : i32
    %c0_i32_0 = arith.constant 0 : i32
    return %arg0, %c0_i32 : i32, i32
  }
  func.func @transform_1(%arg0: i32) -> (i32, i32) {
    %c0_i32 = arith.constant 0 : i32
    %c0_i32_0 = arith.constant 0 : i32
    %c0_i32_1 = arith.constant 0 : i32
    return %c0_i32, %c0_i32_0 : i32, i32
  }
  func.func @transform_2(%arg0: i32) -> (i32, i32) {
    %c0_i32 = arith.constant 0 : i32
    %c0_i32_0 = arith.constant 0 : i32
    %c0_i32_1 = arith.constant 0 : i32
    return %c0_i32, %c0_i32_0 : i32, i32
  }
  func.func @transform_3(%arg0: i32) -> (i32, i32) {
    %c0_i32 = arith.constant 0 : i32
    %c0_i32_0 = arith.constant 0 : i32
    %c0_i32_1 = arith.constant 0 : i32
    return %c0_i32, %c0_i32_0 : i32, i32
  }
  func.func @transform_4(%arg0: i32) -> (i32, i32) {
    %c0_i32 = arith.constant 0 : i32
    %c0_i32_0 = arith.constant 0 : i32
    %c0_i32_1 = arith.constant 0 : i32
    return %c0_i32, %c0_i32_0 : i32, i32
  }
  func.func @transform_5(%arg0: i32) -> (i32, i32) {
    %c0_i32 = arith.constant 0 : i32
    %c0_i32_0 = arith.constant 0 : i32
    return %arg0, %c0_i32 : i32, i32
  }
}

</mosaic_0001>

<bundles_post_ra>
// kernel: tpu_custom_call.1
= control target key start
LH: loop header
LB: loop body
LE: loop exit
PB: predicated region body
PF: predicated region fallthrough
CT: control target
= control target key end

     0   :  { %10 = vsyncpa [#allocation3], 0  ;;  %s1871_s0 = inlined_call_operand.hbm [shape: bf16[128,256], index: 0, kind: input, shape index: {}]   ;;  %s1872_s1 = inlined_call_operand.hbm [shape: bf16[8,64], index: 1, kind: input, shape index: {}]   ;;  %s1873_s2 = inlined_call_operand.hbm [shape: bf16[256,128], index: 2, kind: input, shape index: {}]   ;;  %s1874_s3 = inlined_call_operand.hbm [shape: bf16[128,128], index: 3, kind: input, shape index: {}]   ;;  %s1875_s4 = inlined_call_operand.hbm [shape: bf16[128,128], index: 4, kind: input, shape index: {}]   ;;  %s1876_s5 = inlined_call_operand.hbm [shape: f32[16,128], index: 5, kind: output, shape index: {}]  }
   0x1   :  { %12 = vsyncpa [#allocation3 + $0x1], 0 }
   0x2   :  { %13 = vsyncpa [#allocation6], 0 }
   0x3   :  { %14 = vsyncpa [#allocation9], 0 }
   0x4   :  { %15 = vsyncpa [#allocation4], 0 }
   0x5   :  { %17 = vsyncpa [#allocation4 + $0x1], 0  ;;  %s1586_s18 = smov 0   ;;  %s1588_s19 = smov 0  }
   0x6   :  { %s1590_s20 = smov 0   ;;  %s1592_s21 = smov 0  }
   0x7 LB: > { %s1607_s22 = sadd.s32 4294967295, %s1542_s21   ;;  %s1003_s23 = sadd.s32 4294967294, %s1542_s21   ;;  %s1542_s21 = sphi %s1592_s21, %s1900_s21   ;;  %s1538_s20 = sphi %s1590_s20, %s1899_s20   ;;  %s1534_s19 = sphi %s1588_s19, %s1898_s19   ;;  %s1530_s18 = sphi %s1586_s18, %s1897_s18  }
   0x8   : > { %p43_p0 = scmp.ne.s32.totalorder %s1534_s19, %s1530_s18  ;;  %p1877_p1 = scmp.eq.s32.totalorder %s1607_s22, 0 }
   0x9   : > { %p157_p3 = scmp.eq.s32.totalorder %s1003_s23, 1  ;;  %p1004_p5 = scmp.ge.s32.totalorder %s1542_s21, 1 }
   0xa   : > { %p1616_p4 = por %p1877_p1, %p43_p0  ;;  %p164_p7 = scmp.lt.s32.totalorder %s1542_s21, 3 }
   0xb   : > { %p1621_p6 = por %p157_p3, %p43_p0  ;;  %s1544_s27 = smov [#allocation5]  }
   0xc   : > { %s1881_s24 = scalar_select %p1616_p4, 1, 0 }
   0xd   : > { %s1882_s25 = scalar_select %p1621_p6, 1, 0 }
   0xe   : > { %p1626_p8 = pnand %p1004_p5, %p164_p7  ;;  %s177_s28 = sshll.u32 %s1544_s27, 4  ;;  %s178_s28 = int_to_ptr.vmem [resolvable:$true] %s177_s28 }
   0xf   : > { %s1545_s30 = smov [#allocation8]   ;;  %s1546_s7 = smov [#allocation7]  }
  0x10   : > { %s1883_s26 = scalar_select %p1626_p8, 1, 0 }
  0x11   : > { %p1203_p10 = pneg %p1626_p8  ;;  %s200_s6 = sshll.u32 %s1545_s30, 4  ;;  %s201_s6 = int_to_ptr.vmem [resolvable:$true] %s200_s6 }
  0x12   : > { %s187_s8 = sshll.u32 %s1546_s7, 4  ;;  %s1349_s9 = scalar_lea.vmem %s178_s28, 64  ;;  %s188_s8 = int_to_ptr.vmem [resolvable:$true] %s187_s8 }
  0x13   : > { %p1635_p11 = pnand %p1203_p10, %p1877_p1  ;;  %p1350_p13 = scmp.ne.s32.totalorder %s178_s28, %s1349_s9 }
  0x14   : > { %p1357_p5 = scmp.lt.s32.totalorder %s178_s28, %s178_s28  ;;  %p1358_p7 = scmp.lt.s32.totalorder %s1349_s9, %s1349_s9 }
  0x15   : > { %p1340_p12 = pneg %p1635_p11 }
  0x16   : > { %p1359_p10 = por %p1358_p7, %p1357_p5 }
  0x17   : > { %p1352_p0 = pnand %p1350_p13, %p1340_p12 }
  0x19   : > { %p1353_p3 = pneg %p1352_p0 }
  0x1b   : > { %p1360_p9 = pnand %p1359_p10, %p1353_p3 }
  0x1d   : > { %1363 = shalt.err (!%p1360_p9)
}
  0x1e   : > { %1206 = dma.hbm_to_vmem [thread:$0]  (!%p1635_p11), %s1872_s1, 64, %s178_s28, [#allocation6]  }
  0x1f   : > { %s1375_s12 = scalar_lea.vmem %s201_s6, 1024  ;;  %p1383_p13 = scmp.lt.s32.totalorder %s201_s6, %s201_s6 }
  0x20   : > { %p1376_p1 = scmp.ne.s32.totalorder %s201_s6, %s1375_s12  ;;  %p1384_p0 = scmp.lt.s32.totalorder %s1375_s12, %s1375_s12 }
  0x22   : > { %p1378_p2 = pnand %p1376_p1, %p1340_p12  ;;  %p1385_p4 = por %p1384_p0, %p1383_p13 }
  0x24   : > { %p1379_p6 = pneg %p1378_p2 }
  0x26   : > { %p1386_p8 = pnand %p1385_p4, %p1379_p6 }
  0x28   : > { %1389 = shalt.err (!%p1386_p8)
}
  0x29   : > { %s1547_s13 = smov 64   ;;  %s1548_s14 = smov 4  }
  0x2a   : > { %1212 = dma.hbm_to_vmem [thread:$0]  (!%p1635_p11), %s1874_s3, 1024, %s201_s6, [#allocation9], %s1547_s13, %s1547_s13, %s1548_s14  }
  0x2b   : > { %s1401_s17 = scalar_lea.vmem %s188_s8, 2048  ;;  %p1409_p3 = scmp.lt.s32.totalorder %s188_s8, %s188_s8 }
  0x2c   : > { %p1402_p9 = scmp.ne.s32.totalorder %s188_s8, %s1401_s17  ;;  %p1410_p5 = scmp.lt.s32.totalorder %s1401_s17, %s1401_s17 }
  0x2e   : > { %p1404_p1 = pnand %p1402_p9, %p1340_p12  ;;  %p1411_p4 = por %p1410_p5, %p1409_p3 }
  0x30   : > { %p1405_p2 = pneg %p1404_p1 }
  0x32   : > { %p1412_p6 = pnand %p1411_p4, %p1405_p2 }
  0x34   : > { %1415 = shalt.err (!%p1412_p6)
}
  0x35   : > { %1209 = dma.hbm_to_vmem [thread:$0]  (!%p1635_p11), %s1873_s2, 2048, %s188_s8, [#allocation6], %s1547_s13, %s1547_s13, %s1548_s14  }
  0x36   : > { %s1549_s28 = smov [#allocation10]  }
  0x37   : > { %s213_s30 = sshll.u32 %s1549_s28, 4  ;;  %s214_s30 = int_to_ptr.vmem [resolvable:$true] %s213_s30 }
  0x38   : > { %s1427_s6 = scalar_lea.vmem %s214_s30, 1024  ;;  %p1435_p13 = scmp.lt.s32.totalorder %s214_s30, %s214_s30 }
  0x39   : > { %p1428_p8 = scmp.ne.s32.totalorder %s214_s30, %s1427_s6  ;;  %p1436_p0 = scmp.lt.s32.totalorder %s1427_s6, %s1427_s6 }
  0x3b   : > { %p1430_p7 = pnand %p1428_p8, %p1340_p12  ;;  %p1437_p9 = por %p1436_p0, %p1435_p13 }
  0x3d   : > { %p1431_p10 = pneg %p1430_p7 }
  0x3f   : > { %p1438_p1 = pnand %p1437_p9, %p1431_p10 }
  0x41   : > { %1441 = shalt.err (!%p1438_p1)
}
  0x42   : > { %1215 = dma.hbm_to_vmem [thread:$0]  (!%p1635_p11), %s1875_s4, 1024, %s214_s30, [#allocation9], %s1547_s13, %s1547_s13, %s1548_s14  }
  0x43   : > { %s1674_s8 = sadd.s32 1, %s1542_s21   ;;  %s30_s10 = sadd.s32 1, %s1538_s20 }
  0x44   : > { %s27_s29 = ssub.s32 %s1542_s21, %s1674_s8  ;;  %p37_p12 = scmp.ne.s32.totalorder %s1538_s20, %s1534_s19 }
  0x45   : > { %p28_p2 = scmp.eq.s32.totalorder %s27_s29, 0  ;;  %p38_p3 = scmp.eq.s32.totalorder %s1542_s21, 0 }
  0x46   : > { %p1885_p5 = scmp.eq.s32.totalorder %s1607_s22, 1  ;;  %p1228_p6 = scmp.lt.s32.totalorder %s1542_s21, 2 }
  0x47   : > { %s1690_s12 = scalar_select %p28_p2, %s1538_s20, %s30_s10  }
  0x48   : > { %p1684_p4 = por %p1885_p5, %p37_p12  ;;  %p39_p8 = por %p38_p3, %p37_p12 }
  0x49   : > { %s227_s15 = sand.u32 1, %s1538_s20   ;;  %s1067_s13 = sshll.u32 %s1542_s21, 10 }
  0x4a   : > { %s1886_s11 = scalar_select %p1684_p4, 1, 0 }
  0x4b   : > { %s1010_s16 = sshll.u32 %s227_s15, 6  ;;  %s1697_s23 = scalar_lea.hbm %s1871_s0, %s1067_s13 }
  0x4c   : > { %s231_s27 = scalar_lea.vmem [#allocation2], %s1010_s16  ;;  %p1701_p11 = pnand %p1228_p6, %p39_p8 }
  0x4d   : > { %s239_s28 = sshll.u32 %s231_s27, 4  ;;  %s1705_s6 = scalar_lea.sflag [#allocation3], %s227_s15  ;;  %s1699_s28 = int_to_ptr.vmem [resolvable:$true] %s239_s28 }
  0x4e   : > { %s1442_s7 = scalar_lea.hbm %s1697_s23, 1024  ;;  %p1444_p10 = pneg %p1701_p11 }
  0x4f   : > { %p1443_p7 = scmp.ne.s32.totalorder %s1697_s23, %s1442_s7  ;;  %s1447_s29 = scalar_lea.hbm %s1871_s0, 2048 }
  0x50   : > { %p1448_p9 = scmp.lt.s32.totalorder %s1697_s23, %s1871_s0  ;;  %p1449_p1 = scmp.lt.s32.totalorder %s1447_s29, %s1442_s7 }
  0x51   : > { %p1445_p13 = pnand %p1444_p10, %p1443_p7 }
  0x52   : > { %p1450_p12 = por %p1449_p1, %p1448_p9 }
  0x53   : > { %p1446_p0 = pneg %p1445_p13 }
  0x55   : > { %p1451_p2 = pnand %p1450_p12, %p1446_p0 }
  0x57   : > { %1454 = shalt.err (!%p1451_p2)
}
  0x58   : > { %s1455_s15 = scalar_lea.vmem %s1699_s28, 1024  ;;  %s1550_s14 = smov [#allocation2]  }
  0x59   : > { %p1456_p3 = scmp.ne.s32.totalorder %s1699_s28, %s1455_s15  ;;  %s1460_s17 = sshll.u32 %s1550_s14, 4  ;;  %s1461_s17 = int_to_ptr.vmem [resolvable:$false] %s1460_s17 }
  0x5a   : > { %s1462_s27 = scalar_lea.vmem %s1461_s17, 2048  ;;  %p1463_p8 = scmp.lt.s32.totalorder %s1699_s28, %s1461_s17 }
  0x5b   : > { %p1458_p5 = pnand %p1456_p3, %p1444_p10  ;;  %p1464_p7 = scmp.lt.s32.totalorder %s1462_s27, %s1455_s15 }
  0x5d   : > { %p1459_p6 = pneg %p1458_p5  ;;  %p1465_p13 = por %p1464_p7, %p1463_p8 }
  0x5f   : > { %p1466_p4 = pnand %p1465_p13, %p1459_p6 }
  0x61   : > { %1469 = shalt.err (!%p1466_p4)
}
  0x62   : > { %s1551_s7 = smov 128   ;;  %s1552_s9 = smov 8  }
  0x63   : > { %1219 = dma.hbm_to_vmem [thread:$0]  (!%p1701_p11), %s1697_s23, 1024, %s1699_s28, %s1705_s6, %s1551_s7, %s1551_s7, %s1552_s9  }
  0x64   : > { %p1888_p10 = scmp.ne.s32.totalorder %s1883_s26, 0 }
  0x65   : > { %s1729_s10 = sand.u32 (!%p1888_p10), 1, %s1534_s19   ;;  %p1889_p4 = scmp.ne.s32.totalorder (!%p1888_p10), %s1881_s24, 0 }
  0x66   : > { %251 = sbr.rel (%p1888_p10) target bundleno = 1177 (0x499), region = 40  ;;  %s1015_s29 = sshll.u32 (!%p1888_p10), %s1729_s10, 6 }
  0x67   : > { %s254_s16 = scalar_lea.sflag (!%p1888_p10), [#allocation3], %s1729_s10  ;;  %s1733_s13 = scalar_lea.vmem (!%p1888_p10), [#allocation2], %s1015_s29 }
  0x6b   : > { %1513 = dma.done.wait (%p1889_p4), %s254_s16, 1024  }
  0x6c   : > { %1515 = vsyncadd (%p1889_p4), %s254_s16, 4294966272  ;;  %p1890_p11 = scmp.eq.s32.totalorder %s1607_s22, 0 }
  0x6e   : > { %1517 = dma.done.wait (%p1890_p11), [#allocation6], 2112   ;;  %p1891_p0 = pmov %p1890_p11 }
  0x70   : > { %1519 = vsyncadd (%p1891_p0), [#allocation6], 4294965184  ;;  %p1892_p9 = pmov %p1891_p0 }
  0x71   : > { %p1893_p1 = pmov %p1891_p0 }
  0x72   : > { %1521 = dma.done.wait (%p1892_p9), [#allocation9], 2048  }
  0x73   : > { %1523 = vsyncadd (%p1893_p1), [#allocation9], 4294965248  ;;  %v1276_v0 = vld [vmem:[#allocation7 + $0x78] sm:$0xff]   ;;  %v1278_v2 = vld [vmem:[#allocation7 + $0x70] sm:$0xff]   ;;  %v1553_v24 = vmov 0.0   ;;  %vm1554_vm0 = vmmov 0  }
  0x74   : > { %v1277_v1 = vld [vmem:[#allocation7 + $0x38] sm:$0xff]   ;;  %1068 = vmatprep.subr.bf16.mxu0 %v1276_v0  ;;  %v1279_v3 = vld [vmem:[#allocation7 + $0x30] sm:$0xff]   ;;  %v1280_v4 = vld [vmem:[#allocation7 + $0x68] sm:$0xff]   ;;  %1131 = vmatprep.subr.bf16.mxu1 %v1553_v24  ;;  %vm620_vm1 = vcmask 523264   ;;  %s1020_s24 = sshll.u32 %s1729_s10, 3  ;;  %s1063_s28 = sshll.u32 %s1607_s22, 7 }
  0x75   : > { %1069 = vmatpush3.bf16.msra.mxu0 %v1277_v1  ;;  %v1281_v5 = vld [vmem:[#allocation7 + $0x28] sm:$0xff]   ;;  %v1282_v6 = vld [vmem:[#allocation7 + $0x60] sm:$0xff]   ;;  %v1284_v8 = vld [vmem:[#allocation7 + $0x58] sm:$0xff]   ;;  %1139 = vmatprep.mubr.msk.bf16.mxu1 %vm1554_vm0, %v1553_v24  ;;  %s299_s26 = scalar_lea.vmem [#allocation11], %s1020_s24  ;;  %s1830_s15 = scalar_lea.hbm %s1876_s5, %s1063_s28 }
  0x76   : > { %1070 = vmatprep.subr.bf16.mxu0 %v1278_v2  ;;  %v1283_v7 = vld [vmem:[#allocation7 + $0x20] sm:$0xff]   ;;  %v1285_v9 = vld [vmem:[#allocation7 + $0x18] sm:$0xff]   ;;  %v1286_v10 = vld [vmem:[#allocation7 + $0x50] sm:$0xff]   ;;  %s895_s23 = sshll.u32 %s299_s26, 4  ;;  %s882_s14 = scalar_lea.sflag [#allocation4], %s1729_s10  ;;  %s1825_s23 = int_to_ptr.vmem [resolvable:$true] %s895_s23 }
  0x77   : > { %v1294_v11 = vld [vmem:[%s1733_s13 + $0x4] ss:$8 sps:$4 sm:$0xff]   ;;  %v1287_v12 = vld [vmem:[#allocation7 + $0x10] sm:$0xff]   ;;  %v1292_v17 = vld [vmem:[%s1733_s13] ss:$8 sps:$4 sm:$0xff]   ;;  %s1470_s17 = scalar_lea.vmem %s1825_s23, 128 }
  0x78   : > { %510 = vmatprep.mubr.bf16.mxu0 %v1294_v11  ;;  %v1288_v13 = vld [vmem:[#allocation7 + $0x48] sm:$0xff]   ;;  %v1290_v15 = vld [vmem:[#allocation7 + $0x40] sm:$0xff]   ;;  %v1295_v18 = vld [vmem:[%s1733_s13 + $0x14] ss:$8 sps:$4 sm:$0xff]   ;;  %p1471_p12 = scmp.ne.s32.totalorder %s1825_s23, %s1470_s17  ;;  %p1894_p2 = scmp.ne.s32.totalorder %s1886_s11, 0 }
  0x79   : > { %1071 = vmatpush3.bf16.msra.mxu0 %v1279_v3  ;;  %v1289_v14 = vld [vmem:[#allocation7 + $0x8] sm:$0xff]   ;;  %v1291_v16 = vld [vmem:[#allocation7] sm:$0xff]   ;;  %v1301_v22 = vld [vmem:[%s1733_s13 + $0x34] ss:$8 sps:$4 sm:$0xff]   ;;  %s1555_s22 = smov [#allocation11]  }
  0x7a   : > { %1072 = vmatprep.subr.bf16.mxu0 %v1280_v4  ;;  %v1297_v19 = vld [vmem:[%s1733_s13 + $0x10] ss:$8 sps:$4 sm:$0xff]   ;;  %v1298_v20 = vld [vmem:[%s1733_s13 + $0x24] ss:$8 sps:$4 sm:$0xff]   ;;  %v1300_v21 = vld [vmem:[%s1733_s13 + $0x20] ss:$8 sps:$4 sm:$0xff]   ;;  %p1472_p3 = pnand %p1471_p12, %p1894_p2 }
  0x7b   : > { %v1303_v23 = vld [vmem:[%s1733_s13 + $0x30] ss:$8 sps:$4 sm:$0xff]   ;;  %s1474_s27 = sshll.u32 %s1555_s22, 4  ;;  %s1475_s27 = int_to_ptr.vmem [resolvable:$false] %s1474_s27 }
  0x7c   : > { %p1473_p5 = pneg %p1472_p3  ;;  %s1476_s7 = scalar_lea.vmem %s1475_s27, 256 }
  0x7d   : > { %1073 = vmatpush3.bf16.msra.mxu0 %v1281_v5  ;;  %p1477_p6 = scmp.lt.s32.totalorder %s1825_s23, %s1475_s27  ;;  %p1478_p8 = scmp.lt.s32.totalorder %s1476_s7, %s1470_s17 }
  0x7e   : > { %1074 = vmatprep.subr.bf16.mxu0 %v1282_v6 }
  0x7f   : > { %p1479_p7 = por %p1478_p8, %p1477_p6 }
  0x81   : > { %1075 = vmatpush3.bf16.msra.mxu0 %v1283_v7  ;;  %p1480_p13 = pnand %p1479_p7, %p1473_p5 }
  0x82   : > { %1076 = vmatprep.subr.bf16.mxu0 %v1284_v8 }
  0x85   : > { %1077 = vmatpush3.bf16.msra.mxu0 %v1285_v9 }
  0x86   : > { %1078 = vmatprep.subr.bf16.mxu0 %v1286_v10 }
  0x89   : > { %1079 = vmatpush3.bf16.msra.mxu0 %v1287_v12 }
  0x8a   : > { %1080 = vmatprep.subr.bf16.mxu0 %v1288_v13 }
  0x8d   : > { %1081 = vmatpush3.bf16.msra.mxu0 %v1289_v14 }
  0x8e   : > { %1082 = vmatprep.subr.bf16.mxu0 %v1290_v15 }
  0x91   : > { %1083 = vmatpush3.bf16.msra.mxu0 %v1291_v16 }
  0x92   : > { %1163 = vmatprep.subr.bf16.mxu0 %v1553_v24 }
  0x94   : > { %511 = vmatmul.mubr.bf16.vlgmr.msra.gmra.mxu0 %v1292_v17 }
  0x95   : > { %518 = vmatprep.mubr.bf16.mxu0 %v1295_v18 }
  0x9c   : > { %519 = vmatmul.mubr.bf16.gmra.mxu0 %v1297_v19 }
  0x9d   : > { %526 = vmatprep.mubr.bf16.mxu0 %v1298_v20 }
  0xa4   : > { %527 = vmatmul.mubr.bf16.gmra.mxu0 %v1300_v21 }
  0xa5   : > { %534 = vmatprep.mubr.bf16.mxu0 %v1301_v22 }
  0xac   : > { %535 = vmatmul.mubr.bf16.gmra.mxu0 %v1303_v23 }
  0xad   : > { %1179 = vmatprep.mubr.msk.bf16.mxu0 %vm1554_vm0, %v1553_v24 }
 0x154   : > { %v1084_v25 = vpop.f32.mrf.mxu0 }
 0x156   : > { %v1085_v26 = vpop.f32.mrf.mxu0 }
 0x157   : > { %v1775_v44 = vadd.f32 %v1085_v26, %v1084_v25 }
 0x158   : > { %v1087_v27 = vpop.f32.mrf.mxu0 }
 0x159   : > { %v543_v54 = vmul.f32 %v1775_v44, %v1775_v44 }
 0x15a   : > { %v1088_v28 = vpop.f32.mrf.mxu0 }
 0x15b   : > { %v1771_v42 = vadd.f32 %v1088_v28, %v1087_v27  ;;  %v551_v2 = vmul.f32 %v1775_v44, %v543_v54 }
 0x15c   : > { %v1090_v29 = vpop.f32.mrf.mxu0 }
 0x15d   : > { %v544_v51 = vmul.f32 %v1771_v42, %v1771_v42  ;;  %v559_v12 = vmul.f32 0.044715, %v551_v2  ;;  %v615_v2 = vld [vmem:[#allocation5] sm:$0xf] }
 0x15e   : > { %v1091_v30 = vpop.f32.mrf.mxu0 }
 0x15f   : > { %v1765_v38 = vadd.f32 %v1091_v30, %v1090_v29  ;;  %v552_v62 = vmul.f32 %v1771_v42, %v544_v51  ;;  %v567_v20 = vadd.f32 %v1775_v44, %v559_v12  ;;  %v1312_v12 = vld [vmem:[#allocation10 + $0x38] sm:$0xff]  }
 0x160   : > { %v1093_v31 = vpop.f32.mrf.mxu0  ;;  %1164 = vmatpush3.bf16.msra.mxu0 %v1312_v12 }
 0x161   : > { %v545_v46 = vmul.f32 %v1765_v38, %v1765_v38  ;;  %v560_v9 = vmul.f32 0.044715, %v552_v62  ;;  %v575_v25 = vmul.f32 0.7978846, %v567_v20  ;;  %1165 = vmatprep.subr.bf16.mxu0 %v1553_v24  ;;  %v1315_v20 = vld [vmem:[#allocation10 + $0x20] sm:$0xff]  }
 0x162   : > { %v1094_v32 = vpop.f32.mrf.mxu0 }
 0x163   : > { %v1761_v34 = vadd.f32 %v1094_v32, %v1093_v31  ;;  %v553_v56 = vmul.f32 %v1765_v38, %v545_v46  ;;  %v568_v18 = vadd.f32 %v1771_v42, %v560_v9 }
 0x164   : > { %v1096_v33 = vpop.f32.mrf.mxu0 }
 0x165   : > { %v546_v40 = vmul.f32 %v1761_v34, %v1761_v34  ;;  %v561_v3 = vmul.f32 0.044715, %v553_v56  ;;  %v576_v23 = vmul.f32 0.7978846, %v568_v18 }
 0x166   : > { %v1097_v35 = vpop.f32.mrf.mxu0 }
 0x167   : > { %v1763_v36 = vadd.f32 %v1097_v35, %v1096_v33  ;;  %v554_v49 = vmul.f32 %v1761_v34, %v546_v40  ;;  %v569_v13 = vadd.f32 %v1765_v38, %v561_v3  ;;  %v1308_v3 = vld [vmem:[#allocation8 + $0x18] sm:$0xff]  }
 0x168   : > { %v1099_v37 = vpop.f32.mrf.mxu0 }
 0x169   : > { %v547_v39 = vmul.f32 %v1763_v36, %v1763_v36  ;;  %v562_v60 = vmul.f32 0.044715, %v554_v49  ;;  %v577_v21 = vmul.f32 0.7978846, %v569_v13  ;;  %v1313_v13 = vld [vmem:[#allocation10 + $0x30] sm:$0xff]  }
 0x16a   : > { %v1100_v41 = vpop.f32.mrf.mxu0  ;;  %1166 = vmatpush3.bf16.msra.mxu0 %v1313_v13 }
 0x16b   : > { %v1773_v43 = vadd.f32 %v1100_v41, %v1099_v37  ;;  %v555_v47 = vmul.f32 %v1763_v36, %v547_v39  ;;  %v570_v7 = vadd.f32 %v1761_v34, %v562_v60  ;;  %1167 = vmatprep.subr.bf16.mxu0 %v1553_v24 }
 0x16c   : > { %v1102_v45 = vpop.f32.mrf.mxu0 }
 0x16d   : > { %v548_v48 = vmul.f32 %v1773_v43, %v1773_v43  ;;  %v563_v57 = vmul.f32 0.044715, %v555_v47  ;;  %v578_v17 = vmul.f32 0.7978846, %v570_v7 }
 0x16e   : > { %v1103_v50 = vpop.f32.mrf.mxu0 }
 0x16f   : > { %v556_v52 = vmul.f32 %v1773_v43, %v548_v48  ;;  %v1104_v53 = vadd.f32 %v1103_v50, %v1102_v45  ;;  %v571_v4 = vadd.f32 %v1763_v36, %v563_v57 }
 0x170   : > { %v1105_v55 = vpop.f32.mrf.mxu0 }
 0x171   : > { %v564_v58 = vmul.f32 0.044715, %v556_v52  ;;  %v549_v59 = vmul.f32 %v1104_v53, %v1104_v53  ;;  %v579_v14 = vmul.f32 0.7978846, %v571_v4  ;;  %v1309_v4 = vld [vmem:[#allocation8 + $0x10] sm:$0xff]  }
 0x172   : > { %v1106_v61 = vpop.f32.mrf.mxu0 }
 0x173   : > { %v572_v63 = vadd.f32 %v1773_v43, %v564_v58  ;;  %v557_v0 = vmul.f32 %v1104_v53, %v549_v59  ;;  %v1107_v1 = vadd.f32 %v1106_v61, %v1105_v55 }
 0x175   : > { %v565_v5 = vmul.f32 0.044715, %v557_v0  ;;  %v550_v6 = vmul.f32 %v1107_v1, %v1107_v1  ;;  %v580_v8 = vmul.f32 0.7978846, %v572_v63 }
 0x177   : > { %v573_v10 = vadd.f32 %v1104_v53, %v565_v5  ;;  %v558_v11 = vmul.f32 %v1107_v1, %v550_v6  ;;  %1320 = vtanh.f32 %v580_v8  ;;  %v1310_v5 = vld [vmem:[#allocation8 + $0x8] sm:$0xff]   ;;  %v1311_v6 = vld [vmem:[#allocation8] sm:$0xff]  }
 0x179   : > { %v581_v15 = vmul.f32 0.7978846, %v573_v10  ;;  %v566_v16 = vmul.f32 0.044715, %v558_v11 }
 0x17b   : > { %v574_v19 = vadd.f32 %v1107_v1, %v566_v16  ;;  %1322 = vtanh.f32 %v581_v15 }
 0x17c   : > { %1324 = vtanh.f32 %v579_v14  ;;  %v1314_v14 = vld [vmem:[#allocation10 + $0x28] sm:$0xff]  }
 0x17d   : > { %v582_v22 = vmul.f32 0.7978846, %v574_v19  ;;  %1326 = vtanh.f32 %v578_v17  ;;  %1168 = vmatpush3.bf16.msra.mxu0 %v1314_v14 }
 0x17e   : > { %1169 = vmatprep.subr.bf16.mxu0 %v1553_v24 }
 0x17f   : > { %1328 = vtanh.f32 %v582_v22  ;;  %v1317_v22 = vld [vmem:[#allocation10 + $0x10] sm:$0xff]  }
 0x180   : > { %1330 = vtanh.f32 %v577_v21  ;;  %v1316_v21 = vld [vmem:[#allocation10 + $0x18] sm:$0xff]  }
 0x181   : > { %1332 = vtanh.f32 %v576_v23  ;;  %1170 = vmatpush3.bf16.msra.mxu0 %v1315_v20  ;;  %v1318_v23 = vld [vmem:[#allocation10 + $0x8] sm:$0xff]  }
 0x182   : > { %1334 = vtanh.f32 %v575_v25  ;;  %1171 = vmatprep.subr.bf16.mxu0 %v1553_v24  ;;  %v1319_v25 = vld [vmem:[#allocation10] sm:$0xff]  }
 0x184   : > { %v1321_v26 = vpop.eup %1320 }
 0x185   : > { %v596_v31 = vadd.f32 1.0, %v1321_v26  ;;  %1172 = vmatpush3.bf16.msra.mxu0 %v1316_v21 }
 0x186   : > { %1173 = vmatprep.subr.bf16.mxu0 %v1553_v24 }
 0x187   : > { %v604_v41 = vmul.f32 0.5, %v596_v31 }
 0x188   : > { %v1323_v27 = vpop.eup %1322 }
 0x189   : > { %v597_v28 = vadd.f32 1.0, %v1323_v27  ;;  %v1325_v29 = vpop.eup %1324  ;;  %v612_v54 = vmul.f32 %v1773_v43, %v604_v41  ;;  %1174 = vmatpush3.bf16.msra.mxu0 %v1317_v22 }
 0x18a   : > { %v1327_v30 = vpop.eup %1326  ;;  %v595_v37 = vadd.f32 1.0, %v1325_v29  ;;  %1175 = vmatprep.subr.bf16.mxu0 %v1553_v24 }
 0x18b   : > { %v605_v35 = vmul.f32 0.5, %v597_v28  ;;  %v594_v45 = vadd.f32 1.0, %v1327_v30 }
 0x18c   : > { %v1329_v32 = vpop.eup %1328  ;;  %v603_v49 = vmul.f32 0.5, %v595_v37 }
 0x18d   : > { %v598_v33 = vadd.f32 1.0, %v1329_v32  ;;  %v1331_v39 = vpop.eup %1330  ;;  %v613_v47 = vmul.f32 %v1104_v53, %v605_v35  ;;  %v602_v55 = vmul.f32 0.5, %v594_v45  ;;  %1176 = vmatpush3.bf16.msra.mxu0 %v1318_v23 }
 0x18e   : > { %v1333_v46 = vpop.eup %1332  ;;  %v593_v50 = vadd.f32 1.0, %v1331_v39  ;;  %v611_v57 = vmul.f32 %v1763_v36, %v603_v49  ;;  %1177 = vmatprep.subr.bf16.mxu0 %v1553_v24 }
 0x18f   : > { %v606_v40 = vmul.f32 0.5, %v598_v33  ;;  %v1335_v51 = vpop.eup %1334  ;;  %v592_v56 = vadd.f32 1.0, %v1333_v46  ;;  %v610_v61 = vmul.f32 %v1761_v34, %v602_v55  ;;  %v1304_v34 = vld [vmem:[#allocation8 + $0x38] sm:$0xff]  }
 0x190   : > { %v601_v58 = vmul.f32 0.5, %v593_v50  ;;  %v591_v59 = vadd.f32 1.0, %v1335_v51  ;;  %v618_v60 = vpack.c.bf16 %v612_v54, %v611_v57 }
 0x191   : > { %v614_v48 = vmul.f32 %v1107_v1, %v606_v40  ;;  %v600_v53 = vmul.f32 0.5, %v592_v56  ;;  %1178 = vmatpush3.bf16.msra.mxu0 %v1319_v25 }
 0x192   : > { %v609_v62 = vmul.f32 %v1765_v38, %v601_v58  ;;  %v599_v63 = vmul.f32 0.5, %v591_v59  ;;  %v1305_v38 = vld [vmem:[#allocation8 + $0x30] sm:$0xff]  }
 0x193   : > { %v619_v52 = vpack.c.bf16 %v614_v48, %v613_v47  ;;  %v608_v0 = vmul.f32 %v1771_v42, %v600_v53  ;;  %v1306_v42 = vld [vmem:[#allocation8 + $0x28] sm:$0xff]  }
 0x194   : > { %v617_v43 = vpack.c.bf16 %v610_v61, %v609_v62  ;;  %v607_v36 = vmul.f32 %v1775_v44, %v599_v63  ;;  %v1307_v44 = vld [vmem:[#allocation8 + $0x20] sm:$0xff]  }
 0x195   : > { %1132 = vmatpush3.bf16.msra.mxu1 %v619_v52 }
 0x196   : > { %1133 = vmatprep.subr.bf16.mxu1 %v1553_v24  ;;  %v616_v1 = vpack.c.bf16 %v608_v0, %v607_v36 }
 0x199   : > { %1134 = vmatpush3.bf16.msra.mxu1 %v618_v60 }
 0x19a   : > { %1135 = vmatprep.subr.bf16.mxu1 %v1553_v24 }
 0x19d   : > { %1136 = vmatpush3.bf16.msra.mxu1 %v617_v43 }
 0x19e   : > { %1137 = vmatprep.subr.bf16.mxu1 %v1553_v24 }
 0x1a1   : > { %1138 = vmatpush3.bf16.msra.mxu1 %v616_v1 }
 0x1a2   : > { %1143 = vmatprep.subr.bf16.mxu1 %v1553_v24 }
 0x1a4   : > { %1140 = vmatmul.mubr.msk.bf16.vlgmr.msra.gmra.mxu1 %vm620_vm1, %v615_v2 }
 0x1a5   : > { %1144 = vmatpush3.bf16.msra.mxu1 %v1304_v34  ;;  %1159 = vmatprep.mubr.msk.bf16.mxu1 %vm1554_vm0, %v1553_v24 }
 0x1a6   : > { %1145 = vmatprep.subr.bf16.mxu1 %v1553_v24 }
 0x1a9   : > { %1146 = vmatpush3.bf16.msra.mxu1 %v1305_v38 }
 0x1aa   : > { %1147 = vmatprep.subr.bf16.mxu1 %v1553_v24 }
 0x1ad   : > { %1148 = vmatpush3.bf16.msra.mxu1 %v1306_v42 }
 0x1ae   : > { %1149 = vmatprep.subr.bf16.mxu1 %v1553_v24 }
 0x1b1   : > { %1150 = vmatpush3.bf16.msra.mxu1 %v1307_v44 }
 0x1b2   : > { %1151 = vmatprep.subr.bf16.mxu1 %v1553_v24 }
 0x1b5   : > { %1152 = vmatpush3.bf16.msra.mxu1 %v1308_v3 }
 0x1b6   : > { %1153 = vmatprep.subr.bf16.mxu1 %v1553_v24 }
 0x1b9   : > { %1154 = vmatpush3.bf16.msra.mxu1 %v1309_v4 }
 0x1ba   : > { %1155 = vmatprep.subr.bf16.mxu1 %v1553_v24 }
 0x1bd   : > { %1156 = vmatpush3.bf16.msra.mxu1 %v1310_v5 }
 0x1be   : > { %1157 = vmatprep.subr.bf16.mxu1 %v1553_v24 }
 0x1c1   : > { %1158 = vmatpush3.bf16.msra.mxu1 %v1311_v6 }
 0x264   : > { %v658_v7 = vpop.f32.mrf.mxu1 }
 0x265   : > { %v664_v8 = vpack.c.bf16 %v658_v7, %v658_v7 }
 0x266   : > { %v1141_v9 = vpop.f32.mrf.mxu1 }
 0x267   : > { %1160 = vmatmul.mubr.bf16.vlgmr.msra.gmra.mxu1 %v664_v8 }
 0x268   : > { %v661_v10 = vpop.f32.mrf.mxu1 }
 0x26a   : > { %v1142_v11 = vpop.f32.mrf.mxu1 }
 0x327   : > { %v763_v15 = vpop.f32.mrf.mxu1 }
 0x328   : > { %v769_v16 = vmul.f32 %v763_v15, %v763_v15 }
 0x329   : > { %v1161_v17 = vpop.f32.mrf.mxu1 }
 0x32a   : > { %770 = vadd.xlane.f32.xlu0 %v769_v16 }
 0x32b   : > { %v766_v18 = vpop.f32.mrf.mxu1 }
 0x32d   : > { %v1162_v19 = vpop.f32.mrf.mxu1 }
 0x3b3   : > { %v771_v26 = vpop.xlane.xlu0 %770 }
 0x3b4   : > { %v772_v27 = vadd.f32 1e-12, %v771_v26 }
 0x3b6   : > { %1336 = vrsqrt.f32 %v772_v27 }
 0x3c3   : > { %v1337_v28 = vpop.eup %1336 }
 0x3c4   : > { %v774_v29 = vmul.f32 %v1337_v28, %v763_v15 }
 0x3c6   : > { %v775_v30 = vpack.c.bf16 %v774_v29, %v774_v29 }
 0x3c8   : > { %1180 = vmatmul.mubr.bf16.vlgmr.msra.gmra.mxu0 %v775_v30 }
 0x488   : > { %v874_v24 = vpop.f32.mrf.mxu0 }
 0x489   : > { %880 = vst [vmem:[%s299_s26] sm:$0xff] %v874_v24 }
 0x48a   : > { %v1181_v31 = vpop.f32.mrf.mxu0 }
 0x48b   : > { %1483 = shalt.err (!%p1480_p13)
}
 0x48c   : > { %s1484_s9 = scalar_lea.hbm %s1830_s15, 128  ;;  %s1488_s16 = scalar_lea.hbm %s1876_s5, 256 }
 0x48d   : > { %p1485_p10 = scmp.ne.s32.totalorder %s1830_s15, %s1484_s9  ;;  %p1489_p0 = scmp.lt.s32.totalorder %s1830_s15, %s1876_s5 }
 0x48e   : > { %p1490_p9 = scmp.lt.s32.totalorder %s1488_s16, %s1484_s9 }
 0x48f   : > { %p1486_p4 = pnand %p1485_p10, %p1894_p2 }
 0x490   : > { %p1491_p1 = por %p1490_p9, %p1489_p0 }
 0x491   : > { %p1487_p11 = pneg %p1486_p4 }
 0x493   : > { %p1492_p12 = pnand %p1491_p1, %p1487_p11 }
 0x495   : > { %1495 = shalt.err (!%p1492_p12)
}
 0x496   : > { %1201 = dma.vmem_to_hbm [thread:$0]  (%p1894_p2), %s1825_s23, 128, %s1830_s15, %s882_s14   ;;  %v877_v32 = vpop.f32.mrf.mxu0 }
 0x498   : > { %v1182_v33 = vpop.f32.mrf.mxu0 }
 0x499 PF: > { %s907_s26 = sand.u32 1, %s1530_s18   ;;  %p1895_p3 = scmp.ne.s32.totalorder %s1882_s25, 0 }
 0x49a   : > { %p1896_p5 = scmp.ge.s32.totalorder %s1542_s21, 2  ;;  %s908_s28 = scalar_lea.sflag [#allocation4], %s907_s26 }
 0x49c   : > { %p1221_p6 = pnand %p1896_p5, %p1895_p3 }
 0x49e   : > { %p1222_p8 = pneg %p1221_p6 }
 0x4a0   : > { %1525 = dma.done.wait (%p1222_p8), %s908_s28, 128  }
 0x4a1   : > { %1527 = vsyncadd (%p1222_p8), %s908_s28, 4294967168  ;;  %p20_p2 = scmp.ge.s32.totalorder %s1674_s8, 4   ;;  %s1897_s18 = smov %s1534_s19 }
 0x4a2   : > { %s1898_s19 = smov %s1538_s20  ;;  %s1899_s20 = smov %s1690_s12 }
 0x4a3   : > { %s1900_s21 = smov %s1674_s8  ;;  %22 = sbr.rel (!%p20_p2) target bundleno = 7 (0x7), region = 101 }
 0x4a8   :  { %913 = vsyncpa [#allocation3], 1 }
 0x4a9   :  { %915 = vsyncpa [#allocation3 + $0x1], 1 }
 0x4aa   :  { %916 = vsyncpa [#allocation6], 1 }
 0x4ab   :  { %917 = vsyncpa [#allocation9], 1 }
 0x4ac   :  { %918 = vsyncpa [#allocation4], 1 }
 0x4ad   :  { %920 = vsyncpa [#allocation4 + $0x1], 1 }

// kernel: tpu_custom_call.1
= control target key start
LH: loop header
LB: loop body
LE: loop exit
PB: predicated region body
PF: predicated region fallthrough
CT: control target
= control target key end

     0   :  { %10 = vsyncpa [#allocation3], 0  ;;  %s1871_s0 = inlined_call_operand.hbm [shape: bf16[128,256], index: 0, kind: input, shape index: {}]   ;;  %s1872_s1 = inlined_call_operand.hbm [shape: bf16[8,64], index: 1, kind: input, shape index: {}]   ;;  %s1873_s2 = inlined_call_operand.hbm [shape: bf16[256,128], index: 2, kind: input, shape index: {}]   ;;  %s1874_s3 = inlined_call_operand.hbm [shape: bf16[128,128], index: 3, kind: input, shape index: {}]   ;;  %s1875_s4 = inlined_call_operand.hbm [shape: bf16[128,128], index: 4, kind: input, shape index: {}]   ;;  %s1876_s5 = inlined_call_operand.hbm [shape: f32[16,128], index: 5, kind: output, shape index: {}]  }
   0x1   :  { %12 = vsyncpa [#allocation3 + $0x1], 0 }
   0x2   :  { %13 = vsyncpa [#allocation6], 0 }
   0x3   :  { %14 = vsyncpa [#allocation9], 0 }
   0x4   :  { %15 = vsyncpa [#allocation4], 0 }
   0x5   :  { %17 = vsyncpa [#allocation4 + $0x1], 0  ;;  %s1586_s18 = smov 0   ;;  %s1588_s19 = smov 0  }
   0x6   :  { %s1590_s20 = smov 0   ;;  %s1592_s21 = smov 0  }
   0x7 LB: > { %s1607_s22 = sadd.s32 4294967295, %s1542_s21   ;;  %s1003_s23 = sadd.s32 4294967294, %s1542_s21   ;;  %s1542_s21 = sphi %s1592_s21, %s1900_s21   ;;  %s1538_s20 = sphi %s1590_s20, %s1899_s20   ;;  %s1534_s19 = sphi %s1588_s19, %s1898_s19   ;;  %s1530_s18 = sphi %s1586_s18, %s1897_s18  }
   0x8   : > { %p43_p0 = scmp.ne.s32.totalorder %s1534_s19, %s1530_s18  ;;  %p1877_p1 = scmp.eq.s32.totalorder %s1607_s22, 0 }
   0x9   : > { %p157_p3 = scmp.eq.s32.totalorder %s1003_s23, 1  ;;  %p1004_p5 = scmp.ge.s32.totalorder %s1542_s21, 1 }
   0xa   : > { %p1616_p4 = por %p1877_p1, %p43_p0  ;;  %p164_p7 = scmp.lt.s32.totalorder %s1542_s21, 3 }
   0xb   : > { %p1621_p6 = por %p157_p3, %p43_p0  ;;  %s1544_s27 = smov [#allocation5]  }
   0xc   : > { %s1881_s24 = scalar_select %p1616_p4, 1, 0 }
   0xd   : > { %s1882_s25 = scalar_select %p1621_p6, 1, 0 }
   0xe   : > { %p1626_p8 = pnand %p1004_p5, %p164_p7  ;;  %s177_s28 = sshll.u32 %s1544_s27, 4  ;;  %s178_s28 = int_to_ptr.vmem [resolvable:$true] %s177_s28 }
   0xf   : > { %s1545_s30 = smov [#allocation8]   ;;  %s1546_s7 = smov [#allocation7]  }
  0x10   : > { %s1883_s26 = scalar_select %p1626_p8, 1, 0 }
  0x11   : > { %p1203_p10 = pneg %p1626_p8  ;;  %s200_s6 = sshll.u32 %s1545_s30, 4  ;;  %s201_s6 = int_to_ptr.vmem [resolvable:$true] %s200_s6 }
  0x12   : > { %s187_s8 = sshll.u32 %s1546_s7, 4  ;;  %s1349_s9 = scalar_lea.vmem %s178_s28, 64  ;;  %s188_s8 = int_to_ptr.vmem [resolvable:$true] %s187_s8 }
  0x13   : > { %p1635_p11 = pnand %p1203_p10, %p1877_p1  ;;  %p1350_p13 = scmp.ne.s32.totalorder %s178_s28, %s1349_s9 }
  0x14   : > { %p1357_p5 = scmp.lt.s32.totalorder %s178_s28, %s178_s28  ;;  %p1358_p7 = scmp.lt.s32.totalorder %s1349_s9, %s1349_s9 }
  0x15   : > { %p1340_p12 = pneg %p1635_p11 }
  0x16   : > { %p1359_p10 = por %p1358_p7, %p1357_p5 }
  0x17   : > { %p1352_p0 = pnand %p1350_p13, %p1340_p12 }
  0x19   : > { %p1353_p3 = pneg %p1352_p0 }
  0x1b   : > { %p1360_p9 = pnand %p1359_p10, %p1353_p3 }
  0x1d   : > { %1363 = shalt.err (!%p1360_p9)
}
  0x1e   : > { %1206 = dma.hbm_to_vmem [thread:$0]  (!%p1635_p11), %s1872_s1, 64, %s178_s28, [#allocation6]  }
  0x1f   : > { %s1375_s12 = scalar_lea.vmem %s201_s6, 1024  ;;  %p1383_p13 = scmp.lt.s32.totalorder %s201_s6, %s201_s6 }
  0x20   : > { %p1376_p1 = scmp.ne.s32.totalorder %s201_s6, %s1375_s12  ;;  %p1384_p0 = scmp.lt.s32.totalorder %s1375_s12, %s1375_s12 }
  0x22   : > { %p1378_p2 = pnand %p1376_p1, %p1340_p12  ;;  %p1385_p4 = por %p1384_p0, %p1383_p13 }
  0x24   : > { %p1379_p6 = pneg %p1378_p2 }
  0x26   : > { %p1386_p8 = pnand %p1385_p4, %p1379_p6 }
  0x28   : > { %1389 = shalt.err (!%p1386_p8)
}
  0x29   : > { %s1547_s13 = smov 64   ;;  %s1548_s14 = smov 4  }
  0x2a   : > { %1212 = dma.hbm_to_vmem [thread:$0]  (!%p1635_p11), %s1874_s3, 1024, %s201_s6, [#allocation9], %s1547_s13, %s1547_s13, %s1548_s14  }
  0x2b   : > { %s1401_s17 = scalar_lea.vmem %s188_s8, 2048  ;;  %p1409_p3 = scmp.lt.s32.totalorder %s188_s8, %s188_s8 }
  0x2c   : > { %p1402_p9 = scmp.ne.s32.totalorder %s188_s8, %s1401_s17  ;;  %p1410_p5 = scmp.lt.s32.totalorder %s1401_s17, %s1401_s17 }
  0x2e   : > { %p1404_p1 = pnand %p1402_p9, %p1340_p12  ;;  %p1411_p4 = por %p1410_p5, %p1409_p3 }
  0x30   : > { %p1405_p2 = pneg %p1404_p1 }
  0x32   : > { %p1412_p6 = pnand %p1411_p4, %p1405_p2 }
  0x34   : > { %1415 = shalt.err (!%p1412_p6)
}
  0x35   : > { %1209 = dma.hbm_to_vmem [thread:$0]  (!%p1635_p11), %s1873_s2, 2048, %s188_s8, [#allocation6], %s1547_s13, %s1547_s13, %s1548_s14  }
  0x36   : > { %s1549_s28 = smov [#allocation10]  }
  0x37   : > { %s213_s30 = sshll.u32 %s1549_s28, 4  ;;  %s214_s30 = int_to_ptr.vmem [resolvable:$true] %s213_s30 }
  0x38   : > { %s1427_s6 = scalar_lea.vmem %s214_s30, 1024  ;;  %p1435_p13 = scmp.lt.s32.totalorder %s214_s30, %s214_s30 }
  0x39   : > { %p1428_p8 = scmp.ne.s32.totalorder %s214_s30, %s1427_s6  ;;  %p1436_p0 = scmp.lt.s32.totalorder %s1427_s6, %s1427_s6 }
  0x3b   : > { %p1430_p7 = pnand %p1428_p8, %p1340_p12  ;;  %p1437_p9 = por %p1436_p0, %p1435_p13 }
  0x3d   : > { %p1431_p10 = pneg %p1430_p7 }
  0x3f   : > { %p1438_p1 = pnand %p1437_p9, %p1431_p10 }
  0x41   : > { %1441 = shalt.err (!%p1438_p1)
}
  0x42   : > { %1215 = dma.hbm_to_vmem [thread:$0]  (!%p1635_p11), %s1875_s4, 1024, %s214_s30, [#allocation9], %s1547_s13, %s1547_s13, %s1548_s14  }
  0x43   : > { %s1674_s8 = sadd.s32 1, %s1542_s21   ;;  %s30_s10 = sadd.s32 1, %s1538_s20 }
  0x44   : > { %s27_s29 = ssub.s32 %s1542_s21, %s1674_s8  ;;  %p37_p12 = scmp.ne.s32.totalorder %s1538_s20, %s1534_s19 }
  0x45   : > { %p28_p2 = scmp.eq.s32.totalorder %s27_s29, 0  ;;  %p38_p3 = scmp.eq.s32.totalorder %s1542_s21, 0 }
  0x46   : > { %p1885_p5 = scmp.eq.s32.totalorder %s1607_s22, 1  ;;  %p1228_p6 = scmp.lt.s32.totalorder %s1542_s21, 2 }
  0x47   : > { %s1690_s12 = scalar_select %p28_p2, %s1538_s20, %s30_s10  }
  0x48   : > { %p1684_p4 = por %p1885_p5, %p37_p12  ;;  %p39_p8 = por %p38_p3, %p37_p12 }
  0x49   : > { %s227_s15 = sand.u32 1, %s1538_s20   ;;  %s1067_s13 = sshll.u32 %s1542_s21, 10 }
  0x4a   : > { %s1886_s11 = scalar_select %p1684_p4, 1, 0 }
  0x4b   : > { %s1010_s16 = sshll.u32 %s227_s15, 6  ;;  %s1697_s23 = scalar_lea.hbm %s1871_s0, %s1067_s13 }
  0x4c   : > { %s231_s27 = scalar_lea.vmem [#allocation2], %s1010_s16  ;;  %p1701_p11 = pnand %p1228_p6, %p39_p8 }
  0x4d   : > { %s239_s28 = sshll.u32 %s231_s27, 4  ;;  %s1705_s6 = scalar_lea.sflag [#allocation3], %s227_s15  ;;  %s1699_s28 = int_to_ptr.vmem [resolvable:$true] %s239_s28 }
  0x4e   : > { %s1442_s7 = scalar_lea.hbm %s1697_s23, 1024  ;;  %p1444_p10 = pneg %p1701_p11 }
  0x4f   : > { %p1443_p7 = scmp.ne.s32.totalorder %s1697_s23, %s1442_s7  ;;  %s1447_s29 = scalar_lea.hbm %s1871_s0, 2048 }
  0x50   : > { %p1448_p9 = scmp.lt.s32.totalorder %s1697_s23, %s1871_s0  ;;  %p1449_p1 = scmp.lt.s32.totalorder %s1447_s29, %s1442_s7 }
  0x51   : > { %p1445_p13 = pnand %p1444_p10, %p1443_p7 }
  0x52   : > { %p1450_p12 = por %p1449_p1, %p1448_p9 }
  0x53   : > { %p1446_p0 = pneg %p1445_p13 }
  0x55   : > { %p1451_p2 = pnand %p1450_p12, %p1446_p0 }
  0x57   : > { %1454 = shalt.err (!%p1451_p2)
}
  0x58   : > { %s1455_s15 = scalar_lea.vmem %s1699_s28, 1024  ;;  %s1550_s14 = smov [#allocation2]  }
  0x59   : > { %p1456_p3 = scmp.ne.s32.totalorder %s1699_s28, %s1455_s15  ;;  %s1460_s17 = sshll.u32 %s1550_s14, 4  ;;  %s1461_s17 = int_to_ptr.vmem [resolvable:$false] %s1460_s17 }
  0x5a   : > { %s1462_s27 = scalar_lea.vmem %s1461_s17, 2048  ;;  %p1463_p8 = scmp.lt.s32.totalorder %s1699_s28, %s1461_s17 }
  0x5b   : > { %p1458_p5 = pnand %p1456_p3, %p1444_p10  ;;  %p1464_p7 = scmp.lt.s32.totalorder %s1462_s27, %s1455_s15 }
  0x5d   : > { %p1459_p6 = pneg %p1458_p5  ;;  %p1465_p13 = por %p1464_p7, %p1463_p8 }
  0x5f   : > { %p1466_p4 = pnand %p1465_p13, %p1459_p6 }
  0x61   : > { %1469 = shalt.err (!%p1466_p4)
}
  0x62   : > { %s1551_s7 = smov 128   ;;  %s1552_s9 = smov 8  }
  0x63   : > { %1219 = dma.hbm_to_vmem [thread:$0]  (!%p1701_p11), %s1697_s23, 1024, %s1699_s28, %s1705_s6, %s1551_s7, %s1551_s7, %s1552_s9  }
  0x64   : > { %p1888_p10 = scmp.ne.s32.totalorder %s1883_s26, 0 }
  0x65   : > { %s1729_s10 = sand.u32 (!%p1888_p10), 1, %s1534_s19   ;;  %p1889_p4 = scmp.ne.s32.totalorder (!%p1888_p10), %s1881_s24, 0 }
  0x66   : > { %251 = sbr.rel (%p1888_p10) target bundleno = 1177 (0x499), region = 40  ;;  %s1015_s29 = sshll.u32 (!%p1888_p10), %s1729_s10, 6 }
  0x67   : > { %s254_s16 = scalar_lea.sflag (!%p1888_p10), [#allocation3], %s1729_s10  ;;  %s1733_s13 = scalar_lea.vmem (!%p1888_p10), [#allocation2], %s1015_s29 }
  0x6b   : > { %1513 = dma.done.wait (%p1889_p4), %s254_s16, 1024  }
  0x6c   : > { %1515 = vsyncadd (%p1889_p4), %s254_s16, 4294966272  ;;  %p1890_p11 = scmp.eq.s32.totalorder %s1607_s22, 0 }
  0x6e   : > { %1517 = dma.done.wait (%p1890_p11), [#allocation6], 2112   ;;  %p1891_p0 = pmov %p1890_p11 }
  0x70   : > { %1519 = vsyncadd (%p1891_p0), [#allocation6], 4294965184  ;;  %p1892_p9 = pmov %p1891_p0 }
  0x71   : > { %p1893_p1 = pmov %p1891_p0 }
  0x72   : > { %1521 = dma.done.wait (%p1892_p9), [#allocation9], 2048  }
  0x73   : > { %1523 = vsyncadd (%p1893_p1), [#allocation9], 4294965248  ;;  %v1276_v0 = vld [vmem:[#allocation7 + $0x78] sm:$0xff]   ;;  %v1278_v2 = vld [vmem:[#allocation7 + $0x70] sm:$0xff]   ;;  %v1553_v24 = vmov 0.0   ;;  %vm1554_vm0 = vmmov 0  }
  0x74   : > { %v1277_v1 = vld [vmem:[#allocation7 + $0x38] sm:$0xff]   ;;  %1068 = vmatprep.subr.bf16.mxu0 %v1276_v0  ;;  %v1279_v3 = vld [vmem:[#allocation7 + $0x30] sm:$0xff]   ;;  %v1280_v4 = vld [vmem:[#allocation7 + $0x68] sm:$0xff]   ;;  %1131 = vmatprep.subr.bf16.mxu1 %v1553_v24  ;;  %vm620_vm1 = vcmask 523264   ;;  %s1020_s24 = sshll.u32 %s1729_s10, 3  ;;  %s1063_s28 = sshll.u32 %s1607_s22, 7 }
  0x75   : > { %1069 = vmatpush3.bf16.msra.mxu0 %v1277_v1  ;;  %v1281_v5 = vld [vmem:[#allocation7 + $0x28] sm:$0xff]   ;;  %v1282_v6 = vld [vmem:[#allocation7 + $0x60] sm:$0xff]   ;;  %v1284_v8 = vld [vmem:[#allocation7 + $0x58] sm:$0xff]   ;;  %1139 = vmatprep.mubr.msk.bf16.mxu1 %vm1554_vm0, %v1553_v24  ;;  %s299_s26 = scalar_lea.vmem [#allocation11], %s1020_s24  ;;  %s1830_s15 = scalar_lea.hbm %s1876_s5, %s1063_s28 }
  0x76   : > { %1070 = vmatprep.subr.bf16.mxu0 %v1278_v2  ;;  %v1283_v7 = vld [vmem:[#allocation7 + $0x20] sm:$0xff]   ;;  %v1285_v9 = vld [vmem:[#allocation7 + $0x18] sm:$0xff]   ;;  %v1286_v10 = vld [vmem:[#allocation7 + $0x50] sm:$0xff]   ;;  %s895_s23 = sshll.u32 %s299_s26, 4  ;;  %s882_s14 = scalar_lea.sflag [#allocation4], %s1729_s10  ;;  %s1825_s23 = int_to_ptr.vmem [resolvable:$true] %s895_s23 }
  0x77   : > { %v1294_v11 = vld [vmem:[%s1733_s13 + $0x4] ss:$8 sps:$4 sm:$0xff]   ;;  %v1287_v12 = vld [vmem:[#allocation7 + $0x10] sm:$0xff]   ;;  %v1292_v17 = vld [vmem:[%s1733_s13] ss:$8 sps:$4 sm:$0xff]   ;;  %s1470_s17 = scalar_lea.vmem %s1825_s23, 128 }
  0x78   : > { %510 = vmatprep.mubr.bf16.mxu0 %v1294_v11  ;;  %v1288_v13 = vld [vmem:[#allocation7 + $0x48] sm:$0xff]   ;;  %v1290_v15 = vld [vmem:[#allocation7 + $0x40] sm:$0xff]   ;;  %v1295_v18 = vld [vmem:[%s1733_s13 + $0x14] ss:$8 sps:$4 sm:$0xff]   ;;  %p1471_p12 = scmp.ne.s32.totalorder %s1825_s23, %s1470_s17  ;;  %p1894_p2 = scmp.ne.s32.totalorder %s1886_s11, 0 }
  0x79   : > { %1071 = vmatpush3.bf16.msra.mxu0 %v1279_v3  ;;  %v1289_v14 = vld [vmem:[#allocation7 + $0x8] sm:$0xff]   ;;  %v1291_v16 = vld [vmem:[#allocation7] sm:$0xff]   ;;  %v1301_v22 = vld [vmem:[%s1733_s13 + $0x34] ss:$8 sps:$4 sm:$0xff]   ;;  %s1555_s22 = smov [#allocation11]  }
  0x7a   : > { %1072 = vmatprep.subr.bf16.mxu0 %v1280_v4  ;;  %v1297_v19 = vld [vmem:[%s1733_s13 + $0x10] ss:$8 sps:$4 sm:$0xff]   ;;  %v1298_v20 = vld [vmem:[%s1733_s13 + $0x24] ss:$8 sps:$4 sm:$0xff]   ;;  %v1300_v21 = vld [vmem:[%s1733_s13 + $0x20] ss:$8 sps:$4 sm:$0xff]   ;;  %p1472_p3 = pnand %p1471_p12, %p1894_p2 }
  0x7b   : > { %v1303_v23 = vld [vmem:[%s1733_s13 + $0x30] ss:$8 sps:$4 sm:$0xff]   ;;  %s1474_s27 = sshll.u32 %s1555_s22, 4  ;;  %s1475_s27 = int_to_ptr.vmem [resolvable:$false] %s1474_s27 }
  0x7c   : > { %p1473_p5 = pneg %p1472_p3  ;;  %s1476_s7 = scalar_lea.vmem %s1475_s27, 256 }
  0x7d   : > { %1073 = vmatpush3.bf16.msra.mxu0 %v1281_v5  ;;  %p1477_p6 = scmp.lt.s32.totalorder %s1825_s23, %s1475_s27  ;;  %p1478_p8 = scmp.lt.s32.totalorder %s1476_s7, %s1470_s17 }
  0x7e   : > { %1074 = vmatprep.subr.bf16.mxu0 %v1282_v6 }
  0x7f   : > { %p1479_p7 = por %p1478_p8, %p1477_p6 }
  0x81   : > { %1075 = vmatpush3.bf16.msra.mxu0 %v1283_v7  ;;  %p1480_p13 = pnand %p1479_p7, %p1473_p5 }
  0x82   : > { %1076 = vmatprep.subr.bf16.mxu0 %v1284_v8 }
  0x85   : > { %1077 = vmatpush3.bf16.msra.mxu0 %v1285_v9 }
  0x86   : > { %1078 = vmatprep.subr.bf16.mxu0 %v1286_v10 }
  0x89   : > { %1079 = vmatpush3.bf16.msra.mxu0 %v1287_v12 }
  0x8a   : > { %1080 = vmatprep.subr.bf16.mxu0 %v1288_v13 }
  0x8d   : > { %1081 = vmatpush3.bf16.msra.mxu0 %v1289_v14 }
  0x8e   : > { %1082 = vmatprep.subr.bf16.mxu0 %v1290_v15 }
  0x91   : > { %1083 = vmatpush3.bf16.msra.mxu0 %v1291_v16 }
  0x92   : > { %1163 = vmatprep.subr.bf16.mxu0 %v1553_v24 }
  0x94   : > { %511 = vmatmul.mubr.bf16.vlgmr.msra.gmra.mxu0 %v1292_v17 }
  0x95   : > { %518 = vmatprep.mubr.bf16.mxu0 %v1295_v18 }
  0x9c   : > { %519 = vmatmul.mubr.bf16.gmra.mxu0 %v1297_v19 }
  0x9d   : > { %526 = vmatprep.mubr.bf16.mxu0 %v1298_v20 }
  0xa4   : > { %527 = vmatmul.mubr.bf16.gmra.mxu0 %v1300_v21 }
  0xa5   : > { %534 = vmatprep.mubr.bf16.mxu0 %v1301_v22 }
  0xac   : > { %535 = vmatmul.mubr.bf16.gmra.mxu0 %v1303_v23 }
  0xad   : > { %1179 = vmatprep.mubr.msk.bf16.mxu0 %vm1554_vm0, %v1553_v24 }
 0x154   : > { %v1084_v25 = vpop.f32.mrf.mxu0 }
 0x156   : > { %v1085_v26 = vpop.f32.mrf.mxu0 }
 0x157   : > { %v1775_v44 = vadd.f32 %v1085_v26, %v1084_v25 }
 0x158   : > { %v1087_v27 = vpop.f32.mrf.mxu0 }
 0x159   : > { %v543_v54 = vmul.f32 %v1775_v44, %v1775_v44 }
 0x15a   : > { %v1088_v28 = vpop.f32.mrf.mxu0 }
 0x15b   : > { %v1771_v42 = vadd.f32 %v1088_v28, %v1087_v27  ;;  %v551_v2 = vmul.f32 %v1775_v44, %v543_v54 }
 0x15c   : > { %v1090_v29 = vpop.f32.mrf.mxu0 }
 0x15d   : > { %v544_v51 = vmul.f32 %v1771_v42, %v1771_v42  ;;  %v559_v12 = vmul.f32 0.044715, %v551_v2  ;;  %v615_v2 = vld [vmem:[#allocation5] sm:$0xf] }
 0x15e   : > { %v1091_v30 = vpop.f32.mrf.mxu0 }
 0x15f   : > { %v1765_v38 = vadd.f32 %v1091_v30, %v1090_v29  ;;  %v552_v62 = vmul.f32 %v1771_v42, %v544_v51  ;;  %v567_v20 = vadd.f32 %v1775_v44, %v559_v12  ;;  %v1312_v12 = vld [vmem:[#allocation10 + $0x38] sm:$0xff]  }
 0x160   : > { %v1093_v31 = vpop.f32.mrf.mxu0  ;;  %1164 = vmatpush3.bf16.msra.mxu0 %v1312_v12 }
 0x161   : > { %v545_v46 = vmul.f32 %v1765_v38, %v1765_v38  ;;  %v560_v9 = vmul.f32 0.044715, %v552_v62  ;;  %v575_v25 = vmul.f32 0.7978846, %v567_v20  ;;  %1165 = vmatprep.subr.bf16.mxu0 %v1553_v24  ;;  %v1315_v20 = vld [vmem:[#allocation10 + $0x20] sm:$0xff]  }
 0x162   : > { %v1094_v32 = vpop.f32.mrf.mxu0 }
 0x163   : > { %v1761_v34 = vadd.f32 %v1094_v32, %v1093_v31  ;;  %v553_v56 = vmul.f32 %v1765_v38, %v545_v46  ;;  %v568_v18 = vadd.f32 %v1771_v42, %v560_v9 }
 0x164   : > { %v1096_v33 = vpop.f32.mrf.mxu0 }
 0x165   : > { %v546_v40 = vmul.f32 %v1761_v34, %v1761_v34  ;;  %v561_v3 = vmul.f32 0.044715, %v553_v56  ;;  %v576_v23 = vmul.f32 0.7978846, %v568_v18 }
 0x166   : > { %v1097_v35 = vpop.f32.mrf.mxu0 }
 0x167   : > { %v1763_v36 = vadd.f32 %v1097_v35, %v1096_v33  ;;  %v554_v49 = vmul.f32 %v1761_v34, %v546_v40  ;;  %v569_v13 = vadd.f32 %v1765_v38, %v561_v3  ;;  %v1308_v3 = vld [vmem:[#allocation8 + $0x18] sm:$0xff]  }
 0x168   : > { %v1099_v37 = vpop.f32.mrf.mxu0 }
 0x169   : > { %v547_v39 = vmul.f32 %v1763_v36, %v1763_v36  ;;  %v562_v60 = vmul.f32 0.044715, %v554_v49  ;;  %v577_v21 = vmul.f32 0.7978846, %v569_v13  ;;  %v1313_v13 = vld [vmem:[#allocation10 + $0x30] sm:$0xff]  }
 0x16a   : > { %v1100_v41 = vpop.f32.mrf.mxu0  ;;  %1166 = vmatpush3.bf16.msra.mxu0 %v1313_v13 }
 0x16b   : > { %v1773_v43 = vadd.f32 %v1100_v41, %v1099_v37  ;;  %v555_v47 = vmul.f32 %v1763_v36, %v547_v39  ;;  %v570_v7 = vadd.f32 %v1761_v34, %v562_v60  ;;  %1167 = vmatprep.subr.bf16.mxu0 %v1553_v24 }
 0x16c   : > { %v1102_v45 = vpop.f32.mrf.mxu0 }
 0x16d   : > { %v548_v48 = vmul.f32 %v1773_v43, %v1773_v43  ;;  %v563_v57 = vmul.f32 0.044715, %v555_v47  ;;  %v578_v17 = vmul.f32 0.7978846, %v570_v7 }
 0x16e   : > { %v1103_v50 = vpop.f32.mrf.mxu0 }
 0x16f   : > { %v556_v52 = vmul.f32 %v1773_v43, %v548_v48  ;;  %v1104_v53 = vadd.f32 %v1103_v50, %v1102_v45  ;;  %v571_v4 = vadd.f32 %v1763_v36, %v563_v57 }
 0x170   : > { %v1105_v55 = vpop.f32.mrf.mxu0 }
 0x171   : > { %v564_v58 = vmul.f32 0.044715, %v556_v52  ;;  %v549_v59 = vmul.f32 %v1104_v53, %v1104_v53  ;;  %v579_v14 = vmul.f32 0.7978846, %v571_v4  ;;  %v1309_v4 = vld [vmem:[#allocation8 + $0x10] sm:$0xff]  }
 0x172   : > { %v1106_v61 = vpop.f32.mrf.mxu0 }
 0x173   : > { %v572_v63 = vadd.f32 %v1773_v43, %v564_v58  ;;  %v557_v0 = vmul.f32 %v1104_v53, %v549_v59  ;;  %v1107_v1 = vadd.f32 %v1106_v61, %v1105_v55 }
 0x175   : > { %v565_v5 = vmul.f32 0.044715, %v557_v0  ;;  %v550_v6 = vmul.f32 %v1107_v1, %v1107_v1  ;;  %v580_v8 = vmul.f32 0.7978846, %v572_v63 }
 0x177   : > { %v573_v10 = vadd.f32 %v1104_v53, %v565_v5  ;;  %v558_v11 = vmul.f32 %v1107_v1, %v550_v6  ;;  %1320 = vtanh.f32 %v580_v8  ;;  %v1310_v5 = vld [vmem:[#allocation8 + $0x8] sm:$0xff]   ;;  %v1311_v6 = vld [vmem:[#allocation8] sm:$0xff]  }
 0x179   : > { %v581_v15 = vmul.f32 0.7978846, %v573_v10  ;;  %v566_v16 = vmul.f32 0.044715, %v558_v11 }
 0x17b   : > { %v574_v19 = vadd.f32 %v1107_v1, %v566_v16  ;;  %1322 = vtanh.f32 %v581_v15 }
 0x17c   : > { %1324 = vtanh.f32 %v579_v14  ;;  %v1314_v14 = vld [vmem:[#allocation10 + $0x28] sm:$0xff]  }
 0x17d   : > { %v582_v22 = vmul.f32 0.7978846, %v574_v19  ;;  %1326 = vtanh.f32 %v578_v17  ;;  %1168 = vmatpush3.bf16.msra.mxu0 %v1314_v14 }
 0x17e   : > { %1169 = vmatprep.subr.bf16.mxu0 %v1553_v24 }
 0x17f   : > { %1328 = vtanh.f32 %v582_v22  ;;  %v1317_v22 = vld [vmem:[#allocation10 + $0x10] sm:$0xff]  }
 0x180   : > { %1330 = vtanh.f32 %v577_v21  ;;  %v1316_v21 = vld [vmem:[#allocation10 + $0x18] sm:$0xff]  }
 0x181   : > { %1332 = vtanh.f32 %v576_v23  ;;  %1170 = vmatpush3.bf16.msra.mxu0 %v1315_v20  ;;  %v1318_v23 = vld [vmem:[#allocation10 + $0x8] sm:$0xff]  }
 0x182   : > { %1334 = vtanh.f32 %v575_v25  ;;  %1171 = vmatprep.subr.bf16.mxu0 %v1553_v24  ;;  %v1319_v25 = vld [vmem:[#allocation10] sm:$0xff]  }
 0x184   : > { %v1321_v26 = vpop.eup %1320 }
 0x185   : > { %v596_v31 = vadd.f32 1.0, %v1321_v26  ;;  %1172 = vmatpush3.bf16.msra.mxu0 %v1316_v21 }
 0x186   : > { %1173 = vmatprep.subr.bf16.mxu0 %v1553_v24 }
 0x187   : > { %v604_v41 = vmul.f32 0.5, %v596_v31 }
 0x188   : > { %v1323_v27 = vpop.eup %1322 }
 0x189   : > { %v597_v28 = vadd.f32 1.0, %v1323_v27  ;;  %v1325_v29 = vpop.eup %1324  ;;  %v612_v54 = vmul.f32 %v1773_v43, %v604_v41  ;;  %1174 = vmatpush3.bf16.msra.mxu0 %v1317_v22 }
 0x18a   : > { %v1327_v30 = vpop.eup %1326  ;;  %v595_v37 = vadd.f32 1.0, %v1325_v29  ;;  %1175 = vmatprep.subr.bf16.mxu0 %v1553_v24 }
 0x18b   : > { %v605_v35 = vmul.f32 0.5, %v597_v28  ;;  %v594_v45 = vadd.f32 1.0, %v1327_v30 }
 0x18c   : > { %v1329_v32 = vpop.eup %1328  ;;  %v603_v49 = vmul.f32 0.5, %v595_v37 }
 0x18d   : > { %v598_v33 = vadd.f32 1.0, %v1329_v32  ;;  %v1331_v39 = vpop.eup %1330  ;;  %v613_v47 = vmul.f32 %v1104_v53, %v605_v35  ;;  %v602_v55 = vmul.f32 0.5, %v594_v45  ;;  %1176 = vmatpush3.bf16.msra.mxu0 %v1318_v23 }
 0x18e   : > { %v1333_v46 = vpop.eup %1332  ;;  %v593_v50 = vadd.f32 1.0, %v1331_v39  ;;  %v611_v57 = vmul.f32 %v1763_v36, %v603_v49  ;;  %1177 = vmatprep.subr.bf16.mxu0 %v1553_v24 }
 0x18f   : > { %v606_v40 = vmul.f32 0.5, %v598_v33  ;;  %v1335_v51 = vpop.eup %1334  ;;  %v592_v56 = vadd.f32 1.0, %v1333_v46  ;;  %v610_v61 = vmul.f32 %v1761_v34, %v602_v55  ;;  %v1304_v34 = vld [vmem:[#allocation8 + $0x38] sm:$0xff]  }
 0x190   : > { %v601_v58 = vmul.f32 0.5, %v593_v50  ;;  %v591_v59 = vadd.f32 1.0, %v1335_v51  ;;  %v618_v60 = vpack.c.bf16 %v612_v54, %v611_v57 }
 0x191   : > { %v614_v48 = vmul.f32 %v1107_v1, %v606_v40  ;;  %v600_v53 = vmul.f32 0.5, %v592_v56  ;;  %1178 = vmatpush3.bf16.msra.mxu0 %v1319_v25 }
 0x192   : > { %v609_v62 = vmul.f32 %v1765_v38, %v601_v58  ;;  %v599_v63 = vmul.f32 0.5, %v591_v59  ;;  %v1305_v38 = vld [vmem:[#allocation8 + $0x30] sm:$0xff]  }
 0x193   : > { %v619_v52 = vpack.c.bf16 %v614_v48, %v613_v47  ;;  %v608_v0 = vmul.f32 %v1771_v42, %v600_v53  ;;  %v1306_v42 = vld [vmem:[#allocation8 + $0x28] sm:$0xff]  }
 0x194   : > { %v617_v43 = vpack.c.bf16 %v610_v61, %v609_v62  ;;  %v607_v36 = vmul.f32 %v1775_v44, %v599_v63  ;;  %v1307_v44 = vld [vmem:[#allocation8 + $0x20] sm:$0xff]  }
 0x195   : > { %1132 = vmatpush3.bf16.msra.mxu1 %v619_v52 }
 0x196   : > { %1133 = vmatprep.subr.bf16.mxu1 %v1553_v24  ;;  %v616_v1 = vpack.c.bf16 %v608_v0, %v607_v36 }
 0x199   : > { %1134 = vmatpush3.bf16.msra.mxu1 %v618_v60 }
 0x19a   : > { %1135 = vmatprep.subr.bf16.mxu1 %v1553_v24 }
 0x19d   : > { %1136 = vmatpush3.bf16.msra.mxu1 %v617_v43 }
 0x19e   : > { %1137 = vmatprep.subr.bf16.mxu1 %v1553_v24 }
 0x1a1   : > { %1138 = vmatpush3.bf16.msra.mxu1 %v616_v1 }
 0x1a2   : > { %1143 = vmatprep.subr.bf16.mxu1 %v1553_v24 }
 0x1a4   : > { %1140 = vmatmul.mubr.msk.bf16.vlgmr.msra.gmra.mxu1 %vm620_vm1, %v615_v2 }
 0x1a5   : > { %1144 = vmatpush3.bf16.msra.mxu1 %v1304_v34  ;;  %1159 = vmatprep.mubr.msk.bf16.mxu1 %vm1554_vm0, %v1553_v24 }
 0x1a6   : > { %1145 = vmatprep.subr.bf16.mxu1 %v1553_v24 }
 0x1a9   : > { %1146 = vmatpush3.bf16.msra.mxu1 %v1305_v38 }
 0x1aa   : > { %1147 = vmatprep.subr.bf16.mxu1 %v1553_v24 }
 0x1ad   : > { %1148 = vmatpush3.bf16.msra.mxu1 %v1306_v42 }
 0x1ae   : > { %1149 = vmatprep.subr.bf16.mxu1 %v1553_v24 }
 0x1b1   : > { %1150 = vmatpush3.bf16.msra.mxu1 %v1307_v44 }
 0x1b2   : > { %1151 = vmatprep.subr.bf16.mxu1 %v1553_v24 }
 0x1b5   : > { %1152 = vmatpush3.bf16.msra.mxu1 %v1308_v3 }
 0x1b6   : > { %1153 = vmatprep.subr.bf16.mxu1 %v1553_v24 }
 0x1b9   : > { %1154 = vmatpush3.bf16.msra.mxu1 %v1309_v4 }
 0x1ba   : > { %1155 = vmatprep.subr.bf16.mxu1 %v1553_v24 }
 0x1bd   : > { %1156 = vmatpush3.bf16.msra.mxu1 %v1310_v5 }
 0x1be   : > { %1157 = vmatprep.subr.bf16.mxu1 %v1553_v24 }
 0x1c1   : > { %1158 = vmatpush3.bf16.msra.mxu1 %v1311_v6 }
 0x264   : > { %v658_v7 = vpop.f32.mrf.mxu1 }
 0x265   : > { %v664_v8 = vpack.c.bf16 %v658_v7, %v658_v7 }
 0x266   : > { %v1141_v9 = vpop.f32.mrf.mxu1 }
 0x267   : > { %1160 = vmatmul.mubr.bf16.vlgmr.msra.gmra.mxu1 %v664_v8 }
 0x268   : > { %v661_v10 = vpop.f32.mrf.mxu1 }
 0x26a   : > { %v1142_v11 = vpop.f32.mrf.mxu1 }
 0x327   : > { %v763_v15 = vpop.f32.mrf.mxu1 }
 0x328   : > { %v769_v16 = vmul.f32 %v763_v15, %v763_v15 }
 0x329   : > { %v1161_v17 = vpop.f32.mrf.mxu1 }
 0x32a   : > { %770 = vadd.xlane.f32.xlu0 %v769_v16 }
 0x32b   : > { %v766_v18 = vpop.f32.mrf.mxu1 }
 0x32d   : > { %v1162_v19 = vpop.f32.mrf.mxu1 }
 0x3b3   : > { %v771_v26 = vpop.xlane.xlu0 %770 }
 0x3b4   : > { %v772_v27 = vadd.f32 1e-12, %v771_v26 }
 0x3b6   : > { %1336 = vrsqrt.f32 %v772_v27 }
 0x3c3   : > { %v1337_v28 = vpop.eup %1336 }
 0x3c4   : > { %v774_v29 = vmul.f32 %v1337_v28, %v763_v15 }
 0x3c6   : > { %v775_v30 = vpack.c.bf16 %v774_v29, %v774_v29 }
 0x3c8   : > { %1180 = vmatmul.mubr.bf16.vlgmr.msra.gmra.mxu0 %v775_v30 }
 0x488   : > { %v874_v24 = vpop.f32.mrf.mxu0 }
 0x489   : > { %880 = vst [vmem:[%s299_s26] sm:$0xff] %v874_v24 }
 0x48a   : > { %v1181_v31 = vpop.f32.mrf.mxu0 }
 0x48b   : > { %1483 = shalt.err (!%p1480_p13)
}
 0x48c   : > { %s1484_s9 = scalar_lea.hbm %s1830_s15, 128  ;;  %s1488_s16 = scalar_lea.hbm %s1876_s5, 256 }
 0x48d   : > { %p1485_p10 = scmp.ne.s32.totalorder %s1830_s15, %s1484_s9  ;;  %p1489_p0 = scmp.lt.s32.totalorder %s1830_s15, %s1876_s5 }
 0x48e   : > { %p1490_p9 = scmp.lt.s32.totalorder %s1488_s16, %s1484_s9 }
 0x48f   : > { %p1486_p4 = pnand %p1485_p10, %p1894_p2 }
 0x490   : > { %p1491_p1 = por %p1490_p9, %p1489_p0 }
 0x491   : > { %p1487_p11 = pneg %p1486_p4 }
 0x493   : > { %p1492_p12 = pnand %p1491_p1, %p1487_p11 }
 0x495   : > { %1495 = shalt.err (!%p1492_p12)
}
 0x496   : > { %1201 = dma.vmem_to_hbm [thread:$0]  (%p1894_p2), %s1825_s23, 128, %s1830_s15, %s882_s14   ;;  %v877_v32 = vpop.f32.mrf.mxu0 }
 0x498   : > { %v1182_v33 = vpop.f32.mrf.mxu0 }
 0x499 PF: > { %s907_s26 = sand.u32 1, %s1530_s18   ;;  %p1895_p3 = scmp.ne.s32.totalorder %s1882_s25, 0 }
 0x49a   : > { %p1896_p5 = scmp.ge.s32.totalorder %s1542_s21, 2  ;;  %s908_s28 = scalar_lea.sflag [#allocation4], %s907_s26 }
 0x49c   : > { %p1221_p6 = pnand %p1896_p5, %p1895_p3 }
 0x49e   : > { %p1222_p8 = pneg %p1221_p6 }
 0x4a0   : > { %1525 = dma.done.wait (%p1222_p8), %s908_s28, 128  }
 0x4a1   : > { %1527 = vsyncadd (%p1222_p8), %s908_s28, 4294967168  ;;  %p20_p2 = scmp.ge.s32.totalorder %s1674_s8, 4   ;;  %s1897_s18 = smov %s1534_s19 }
 0x4a2   : > { %s1898_s19 = smov %s1538_s20  ;;  %s1899_s20 = smov %s1690_s12 }
 0x4a3   : > { %s1900_s21 = smov %s1674_s8  ;;  %22 = sbr.rel (!%p20_p2) target bundleno = 7 (0x7), region = 101 }
 0x4a8   :  { %913 = vsyncpa [#allocation3], 1 }
 0x4a9   :  { %915 = vsyncpa [#allocation3 + $0x1], 1 }
 0x4aa   :  { %916 = vsyncpa [#allocation6], 1 }
 0x4ab   :  { %917 = vsyncpa [#allocation9], 1 }
 0x4ac   :  { %918 = vsyncpa [#allocation4], 1 }
 0x4ad   :  { %920 = vsyncpa [#allocation4 + $0x1], 1 }

</bundles_post_ra>
